<compile_context>
chip_gen: v5e
topology: v5e:2x2
jax: 0.10.0
libtpu: 0.0.40
codegen_flags: <defaults>
</compile_context>

<pallas_src>
import functools

import jax
import jax.numpy as jnp
from jax.experimental import pallas as pl
from jax.experimental.pallas import tpu as pltpu


_ENTITY_ORDER = ("position", "agent", "plates", "doors", "goal")  # torch stack order
_NUM_ENTITIES = 5


def _round_up(x, m):
    return ((x + m - 1) // m) * m


# --------------------------------------------------------------------------
# Fused Pallas kernel
# --------------------------------------------------------------------------
def _fused_kernel(aobs_ref, vobs_ref, act_ref,
                  w1_ref, b1_ref, w2_ref, b2_ref,
                  wpp_ref, bpp_ref,
                  wfa_ref, wfs_ref, wact_ref, ball_ref,
                  sel_ref, selt_ref,
                  out_ref, *, num_visible):
    f32 = jnp.float32
    bf16 = jnp.bfloat16
    V = num_visible

    def dense(x, w_ref, b_ref):          # bf16 operands, f32 accumulation
        return jnp.dot(x.astype(bf16), w_ref[...],
                       preferred_element_type=f32) + b_ref[...]

    def encode(x):                       # all 5 EntityEncoders as one block-diag MLP
        h1 = jnp.maximum(dense(x, w1_ref, b1_ref), 0.0)
        return jnp.maximum(dense(h1, w2_ref, b2_ref), 0.0)

    ae = encode(aobs_ref[...])           # (tb, C) agent entity embeddings (f32)
    phi = dense(ae, wpp_ref, bpp_ref)    # (tb, C) psi∘phi folded into one matmul

    sel = sel_ref[...]                   # (C, E) 0/1 entity-block selector (host-built)
    sel_t = selt_ref[...]                # (E, C)

    # Per-visible-agent entity embeddings and attention logits (V is tiny ->
    # static unroll; vobs_ref[j] is a contiguous (tb, env) slice, no masks).
    ve, betas = [], []
    for j in range(V):
        ve_j = encode(vobs_ref[j])                                           # (tb, C)
        ve.append(ve_j)
        betas.append(jnp.dot(phi * ve_j, sel, preferred_element_type=f32))   # (tb, E)

    # Exact softmax over the V visible agents of every (row, entity) pair.
    gmax = betas[0]
    for j in range(1, V):
        gmax = jnp.maximum(gmax, betas[j])
    e_b = [jnp.exp(b - gmax) for b in betas]
    denom = e_b[0]
    for j in range(1, V):
        denom = denom + e_b[j]
    inv = 1.0 / denom                                                        # (tb, E)

    # alpha-weighted sum of the visible embeddings, per entity block.
    summed = None
    for j in range(V):
        alpha_c = jnp.dot(e_b[j] * inv, sel_t, preferred_element_type=f32)   # (tb, C)
        contrib = alpha_c * ve[j]
        summed = contrib if summed is None else summed + contrib

    # fc_final; action encoder pre-folded into wact/ball on the host.
    out = (jnp.dot(ae.astype(bf16), wfa_ref[...], preferred_element_type=f32)
           + jnp.dot(summed.astype(bf16), wfs_ref[...], preferred_element_type=f32)
           + jnp.dot(act_ref[...], wact_ref[...], preferred_element_type=f32)
           + ball_ref[...])
    out_ref[...] = out.astype(out_ref.dtype)


# --------------------------------------------------------------------------
# Host-side parameter preparation (done once)
# --------------------------------------------------------------------------
def prepare_params(p):
    D = p["dim"]
    L = p["observation_length"]
    env = 4 * L + 2
    E = _NUM_ENTITIES
    C = E * D
    Dp = D if D % 128 == 0 else _round_up(D, 128)   # lane-dense output padding
    # input slices per entity in torch stack order (coords, agents, plates, doors, goals)
    in_slices = ((4 * L, 4 * L + 2), (0, L), (L, 2 * L), (2 * L, 3 * L), (3 * L, 4 * L))

    w1 = jnp.zeros((env, C), jnp.float32)
    w2 = jnp.zeros((C, C), jnp.float32)
    b1, b2 = [], []
    for e, (name, (s0, s1)) in enumerate(zip(_ENTITY_ORDER, in_slices)):
        w1 = w1.at[s0:s1, e * D:(e + 1) * D].set(p[f"{name}_w1"].T)
        w2 = w2.at[e * D:(e + 1) * D, e * D:(e + 1) * D].set(p[f"{name}_w2"].T)
        b1.append(p[f"{name}_b1"])
        b2.append(p[f"{name}_b2"])
    b1 = jnp.concatenate(b1)[None, :]
    b2 = jnp.concatenate(b2)[None, :]

    # psi & phi are linear-linear with no nonlinearity between -> fold to one
    # block-diagonal (C, C) matrix.
    wc = p["psi_w"].T @ p["phi_w"].T                               # (D, D)
    bc = p["psi_b"] @ p["phi_w"].T + p["phi_b"]                    # (D,)
    eye = jnp.eye(E, dtype=jnp.float32)
    wpp = jnp.kron(eye, wc)                                        # (C, C)
    bpp = jnp.tile(bc, E)[None, :]

    wfin_t = p["final_w"].T                                        # (11D, D)
    wf_a = wfin_t[0:C]                                             # agent entities
    wf_s = wfin_t[C:2 * C]                                         # attention-summed
    wf_act = wfin_t[2 * C:2 * C + D]                               # action slot (D, D)
    wact = p["action_w"].T @ wf_act                                # (action_in, D)
    ball = (p["final_b"] + p["action_b"] @ wf_act)[None, :]        # folded bias

    def pad_out(w):   # zero-pad output columns so the final store is lane-dense
        return jnp.pad(w, ((0, 0), (0, Dp - D)))

    # 0/1 entity-block selectors for the tiny per-entity reductions (built once
    # on the host, kept VMEM-resident, instead of per-step iota/where).
    c_i = jnp.arange(C)[:, None] // D
    e_i = jnp.arange(E)[None, :]
    sel = (c_i == e_i).astype(jnp.float32)                         # (C, E)
    sel_t = sel.T                                                  # (E, C)

    bf = jnp.bfloat16
    return dict(dim=D, dim_out_pad=Dp, observation_length=L, env_dim=env,
                w1=w1.astype(bf), b1=b1, w2=w2.astype(bf), b2=b2,
                wpp=wpp.astype(bf), bpp=bpp,
                wf_a=pad_out(wf_a).astype(bf), wf_s=pad_out(wf_s).astype(bf),
                wact=pad_out(wact).astype(bf), ball=pad_out(ball),
                sel=sel, sel_t=sel_t)


# --------------------------------------------------------------------------
# Forward pass wrapper (single pallas_call)
# --------------------------------------------------------------------------
def _choose_tile(B, C, V):
    """Row tile: >=2 grid steps when possible (v7x megacore), multiple of 8,
    capped at 512, and small enough that the (V+4) f32 (tb, C) in-kernel
    intermediates stay well under the default scoped-VMEM limits."""
    tb = min(512, _round_up(max(-(-B // 2), 1), 8))
    budget = 12 * 1024 * 1024
    per_row = (V + 4) * C * 4
    cap = max(8, (budget // per_row) // 8 * 8)
    return max(8, min(tb, cap))


def observation_action_encoder(prep, agent, observation, action):
    """observation: (batch, num_agents, env_dim), action: (batch, action_in).
    Returns (batch, dim)."""
    assert action.ndim == 2, "Action must have a batch dimension."
    B, A, env = observation.shape
    assert env == prep["env_dim"]
    D, Dp = prep["dim"], prep["dim_out_pad"]
    V = A - 1
    assert V >= 1
    act_in = action.shape[1]
    C = _NUM_ENTITIES * D

    others = [a for a in range(A) if a != agent]
    aobs = observation[:, agent, :].astype(jnp.bfloat16)                  # (B, env)
    # V-major layout: kernel indexes vobs_ref[j] -> contiguous (tb, env) slice.
    vobs = jnp.transpose(observation[:, others, :],
                         (1, 0, 2)).astype(jnp.bfloat16)                  # (V, B, env)
    act = action.astype(jnp.bfloat16)                                     # (B, act_in)

    tb = _choose_tile(B, C, V)
    B_pad = _round_up(B, tb)
    if B_pad != B:                      # pad batch, slice the tail off afterwards
        pad = B_pad - B
        aobs = jnp.pad(aobs, ((0, pad), (0, 0)))
        vobs = jnp.pad(vobs, ((0, 0), (0, pad), (0, 0)))
        act = jnp.pad(act, ((0, pad), (0, 0)))
    grid = (B_pad // tb,)

    weights = (prep["w1"], prep["b1"], prep["w2"], prep["b2"],
               prep["wpp"], prep["bpp"],
               prep["wf_a"], prep["wf_s"], prep["wact"], prep["ball"],
               prep["sel"], prep["sel_t"])

    def weight_spec(arr):               # constant block -> DMA'd once, VMEM-resident
        return pl.BlockSpec(arr.shape, lambda i: (0, 0))

    kernel = functools.partial(_fused_kernel, num_visible=V)

    out = pl.pallas_call(
        kernel,
        out_shape=jax.ShapeDtypeStruct((B_pad, Dp), jnp.float32),
        grid=grid,
        in_specs=[pl.BlockSpec((tb, env), lambda i: (i, 0)),
                  pl.BlockSpec((V, tb, env), lambda i: (0, i, 0)),
                  pl.BlockSpec((tb, act_in), lambda i: (i, 0))]
                 + [weight_spec(w) for w in weights],
        out_specs=pl.BlockSpec((tb, Dp), lambda i: (i, 0)),
        compiler_params=pltpu.CompilerParams(
            dimension_semantics=("parallel",)),
    )(aobs, vobs, act, *weights)
    return out[:B, :D]


# --------------------------------------------------------------------------
# Deterministic parameter init (PyTorch nn.Linear-style uniform bounds)
# --------------------------------------------------------------------------
def _init_linear(key, out_f, in_f):
    k1, k2 = jax.random.split(key)
    bound = 1.0 / (in_f ** 0.5)
    w = jax.random.uniform(k1, (out_f, in_f), jnp.float32, -bound, bound)
    b = jax.random.uniform(k2, (out_f,), jnp.float32, -bound, bound)
    return w, b


def init_params(key, observation_length, dim, attention_dim, action_in_features):
    p = {"dim": dim, "observation_length": observation_length}
    keys = iter(jax.random.split(key, 16))
    in_feats = {"agent": observation_length, "plates": observation_length,
                "doors": observation_length, "goal": observation_length,
                "position": 2}
    for name in ("agent", "plates", "doors", "goal", "position"):
        p[f"{name}_w1"], p[f"{name}_b1"] = _init_linear(next(keys), dim, in_feats[name])
        p[f"{name}_w2"], p[f"{name}_b2"] = _init_linear(next(keys), dim, dim)
    p["action_w"], p["action_b"] = _init_linear(next(keys), dim, action_in_features)
    p["psi_w"], p["psi_b"] = _init_linear(next(keys), attention_dim, dim)
    p["phi_w"], p["phi_b"] = _init_linear(next(keys), dim, attention_dim)
    # fc_agent exists in the PyTorch module but is never used in forward().
    p["fc_agent_w"], p["fc_agent_b"] = _init_linear(next(keys), dim, dim)
    p["final_w"], p["final_b"] = _init_linear(next(keys), dim, (2 * 5 + 1) * dim)
    return p


# --------------------------------------------------------------------------
# Pure-JAX reference (for correctness check)
# --------------------------------------------------------------------------
def extract_observation_grids(obs_flat, observation_length):
    L = observation_length
    return (obs_flat[:, 0 * L:1 * L], obs_flat[:, 1 * L:2 * L],
            obs_flat[:, 2 * L:3 * L], obs_flat[:, 3 * L:4 * L],
            obs_flat[:, 4 * L:4 * L + 2])


def _ref_forward(p, agent, observation, action):
    def lin(x, w, b):
        return x @ w.T + b

    def mlp(x, name):
        h1 = jax.nn.relu(lin(x, p[f"{name}_w1"], p[f"{name}_b1"]))
        return jax.nn.relu(lin(h1, p[f"{name}_w2"], p[f"{name}_b2"]))

    def obs_enc(obs):
        B, A, env = obs.shape
        flat = obs.reshape(B * A, env)
        ag, plt, dr, gl, co = extract_observation_grids(flat, p["observation_length"])
        stacked = jnp.stack(
            [mlp(co, "position"), mlp(ag, "agent"), mlp(plt, "plates"),
             mlp(dr, "doors"), mlp(gl, "goal")], axis=0)
        return stacked.reshape(5, B, A, p["dim"]).transpose(1, 0, 2, 3)

    B, num_agents, _ = observation.shape
    D = p["dim"]
    action_e = lin(action, p["action_w"], p["action_b"])
    other = [a for a in range(num_agents) if a != agent]
    vis_enc = obs_enc(observation[:, other])             # (B, 5, V, D)
    ag_enc = obs_enc(observation[:, agent:agent + 1])    # (B, 5, 1, D)
    q = ag_enc.reshape(B * 5, D)
    vis = vis_enc.reshape(B * 5, len(other), D)
    phi = lin(lin(q, p["psi_w"], p["psi_b"]), p["phi_w"], p["phi_b"])
    betas = jnp.sum(phi[:, None, :] * vis, axis=-1)
    alphas = jax.nn.softmax(betas, axis=-1)
    summed = jnp.sum(alphas[:, :, None] * vis, axis=1).reshape(B, 5, D)
    obs_cat = jnp.concatenate([ag_enc.reshape(B, 5, D), summed], axis=1)
    oa = jnp.concatenate([obs_cat.reshape(B, 10 * D), action_e], axis=-1)
    return lin(oa, p["final_w"], p["final_b"])


# --------------------------------------------------------------------------
if __name__ == "__main__":
    key = jax.random.PRNGKey(0)
    k_param, k_obs, k_act = jax.random.split(key, 3)

    observation_length = 24              # one flattened grid
    dim = 32
    attention_dim = 16
    action_in_features = 1
    batch, num_agents = 2, 4
    env_dim = 4 * observation_length + 2  # 4 grids + (x, y)
    agent = 0

    params = init_params(k_param, observation_length, dim, attention_dim,
                         action_in_features)
    prep = prepare_params(params)

    observation = jax.random.normal(k_obs, (batch, num_agents, env_dim), jnp.float32)
    action = jax.random.randint(k_act, (batch, action_in_features), 0, 5).astype(
        jnp.float32)

    out = observation_action_encoder(prep, agent, observation, action)
    out = jax.block_until_ready(out)
    assert out.shape == (batch, dim)

    ref = _ref_forward(params, agent, observation, action)
    assert jnp.all(jnp.isfinite(out))
    # bf16 matmul operands with f32 accumulation -> slightly wider tolerance.
    assert jnp.allclose(out, ref, rtol=2e-2, atol=2e-2), float(
        jnp.max(jnp.abs(out - ref)))

    print("KERNEL_OK")
</pallas_src>

<mosaic_0001>
module attributes {stable_mosaic.version = 11 : i64} {
  func.func @_fused_kernel(%arg0: i32, %arg1: memref<8x98xbf16, #tpu.memory_space<vmem>>, %arg2: memref<3x8x98xbf16, #tpu.memory_space<vmem>>, %arg3: memref<8x1xbf16, #tpu.memory_space<vmem>>, %arg4: memref<98x160xbf16, #tpu.memory_space<vmem>>, %arg5: memref<1x160xf32, #tpu.memory_space<vmem>>, %arg6: memref<160x160xbf16, #tpu.memory_space<vmem>>, %arg7: memref<1x160xf32, #tpu.memory_space<vmem>>, %arg8: memref<160x160xbf16, #tpu.memory_space<vmem>>, %arg9: memref<1x160xf32, #tpu.memory_space<vmem>>, %arg10: memref<160x128xbf16, #tpu.memory_space<vmem>>, %arg11: memref<160x128xbf16, #tpu.memory_space<vmem>>, %arg12: memref<1x128xbf16, #tpu.memory_space<vmem>>, %arg13: memref<1x128xf32, #tpu.memory_space<vmem>>, %arg14: memref<160x5xf32, #tpu.memory_space<vmem>>, %arg15: memref<5x160xf32, #tpu.memory_space<vmem>>, %arg16: memref<8x128xf32, #tpu.memory_space<vmem>>) attributes {dimension_semantics = [#tpu.dimension_semantics<parallel>], iteration_bounds = array<i64: 1>, scalar_prefetch = 0 : i64, scratch_operands = 0 : i64, tpu.core_type = #tpu.core_type<tc>, window_params = [{transform_indices = @transform_0, window_bounds = array<i64: 8, 98>}, {transform_indices = @transform_1, window_bounds = array<i64: 3, 8, 98>}, {transform_indices = @transform_2, window_bounds = array<i64: 8, 1>}, {pipeline_mode = #tpu.pipeline_mode<synchronous>, transform_indices = @transform_3, window_bounds = array<i64: 98, 160>}, {pipeline_mode = #tpu.pipeline_mode<synchronous>, transform_indices = @transform_4, window_bounds = array<i64: 1, 160>}, {pipeline_mode = #tpu.pipeline_mode<synchronous>, transform_indices = @transform_5, window_bounds = array<i64: 160, 160>}, {pipeline_mode = #tpu.pipeline_mode<synchronous>, transform_indices = @transform_6, window_bounds = array<i64: 1, 160>}, {pipeline_mode = #tpu.pipeline_mode<synchronous>, transform_indices = @transform_7, window_bounds = array<i64: 160, 160>}, {pipeline_mode = #tpu.pipeline_mode<synchronous>, transform_indices = @transform_8, window_bounds = array<i64: 1, 160>}, {pipeline_mode = #tpu.pipeline_mode<synchronous>, transform_indices = @transform_9, window_bounds = array<i64: 160, 128>}, {pipeline_mode = #tpu.pipeline_mode<synchronous>, transform_indices = @transform_10, window_bounds = array<i64: 160, 128>}, {pipeline_mode = #tpu.pipeline_mode<synchronous>, transform_indices = @transform_11, window_bounds = array<i64: 1, 128>}, {pipeline_mode = #tpu.pipeline_mode<synchronous>, transform_indices = @transform_12, window_bounds = array<i64: 1, 128>}, {pipeline_mode = #tpu.pipeline_mode<synchronous>, transform_indices = @transform_13, window_bounds = array<i64: 160, 5>}, {pipeline_mode = #tpu.pipeline_mode<synchronous>, transform_indices = @transform_14, window_bounds = array<i64: 5, 160>}, {transform_indices = @transform_15, window_bounds = array<i64: 8, 128>}]} {
    %c0 = arith.constant 0 : index
    %c0_0 = arith.constant 0 : index
    %0 = vector.load %arg1[%c0, %c0_0] : memref<8x98xbf16, #tpu.memory_space<vmem>>, vector<8x98xbf16>
    %c0_1 = arith.constant 0 : index
    %c0_2 = arith.constant 0 : index
    %1 = vector.load %arg4[%c0_1, %c0_2] : memref<98x160xbf16, #tpu.memory_space<vmem>>, vector<98x160xbf16>
    %cst = arith.constant dense<0.000000e+00> : vector<8x160xf32>
    %2 = tpu.matmul %0, %1, %cst {dimension_numbers = #tpu.dot_dimension_numbers<[1], [0], [0], [1], [0, 0, 1, 1], [], []>} : vector<8x98xbf16>, vector<98x160xbf16>, vector<8x160xf32> -> vector<8x160xf32>
    %c0_3 = arith.constant 0 : index
    %c0_4 = arith.constant 0 : index
    %3 = vector.load %arg5[%c0_3, %c0_4] : memref<1x160xf32, #tpu.memory_space<vmem>>, vector<1x160xf32>
    %4 = vector.broadcast %3 : vector<1x160xf32> to vector<8x160xf32>
    %5 = arith.addf %2, %4 : vector<8x160xf32>
    %cst_5 = arith.constant 0.000000e+00 : f32
    %6 = vector.broadcast %cst_5 : f32 to vector<8x160xf32>
    %7 = arith.maximumf %5, %6 : vector<8x160xf32>
    %8 = arith.truncf %7 : vector<8x160xf32> to vector<8x160xbf16>
    %c0_6 = arith.constant 0 : index
    %c0_7 = arith.constant 0 : index
    %9 = vector.load %arg6[%c0_6, %c0_7] : memref<160x160xbf16, #tpu.memory_space<vmem>>, vector<160x160xbf16>
    %cst_8 = arith.constant dense<0.000000e+00> : vector<8x160xf32>
    %10 = tpu.matmul %8, %9, %cst_8 {dimension_numbers = #tpu.dot_dimension_numbers<[1], [0], [0], [1], [0, 0, 1, 1], [], []>} : vector<8x160xbf16>, vector<160x160xbf16>, vector<8x160xf32> -> vector<8x160xf32>
    %c0_9 = arith.constant 0 : index
    %c0_10 = arith.constant 0 : index
    %11 = vector.load %arg7[%c0_9, %c0_10] : memref<1x160xf32, #tpu.memory_space<vmem>>, vector<1x160xf32>
    %12 = vector.broadcast %11 : vector<1x160xf32> to vector<8x160xf32>
    %13 = arith.addf %10, %12 : vector<8x160xf32>
    %cst_11 = arith.constant 0.000000e+00 : f32
    %14 = vector.broadcast %cst_11 : f32 to vector<8x160xf32>
    %15 = arith.maximumf %13, %14 : vector<8x160xf32>
    %16 = arith.truncf %15 : vector<8x160xf32> to vector<8x160xbf16>
    %c0_12 = arith.constant 0 : index
    %c0_13 = arith.constant 0 : index
    %17 = vector.load %arg8[%c0_12, %c0_13] : memref<160x160xbf16, #tpu.memory_space<vmem>>, vector<160x160xbf16>
    %cst_14 = arith.constant dense<0.000000e+00> : vector<8x160xf32>
    %18 = tpu.matmul %16, %17, %cst_14 {dimension_numbers = #tpu.dot_dimension_numbers<[1], [0], [0], [1], [0, 0, 1, 1], [], []>} : vector<8x160xbf16>, vector<160x160xbf16>, vector<8x160xf32> -> vector<8x160xf32>
    %c0_15 = arith.constant 0 : index
    %c0_16 = arith.constant 0 : index
    %19 = vector.load %arg9[%c0_15, %c0_16] : memref<1x160xf32, #tpu.memory_space<vmem>>, vector<1x160xf32>
    %20 = vector.broadcast %19 : vector<1x160xf32> to vector<8x160xf32>
    %21 = arith.addf %18, %20 : vector<8x160xf32>
    %c0_17 = arith.constant 0 : index
    %c0_18 = arith.constant 0 : index
    %22 = vector.load %arg14[%c0_17, %c0_18] : memref<160x5xf32, #tpu.memory_space<vmem>>, vector<160x5xf32>
    %c0_19 = arith.constant 0 : index
    %c0_20 = arith.constant 0 : index
    %23 = vector.load %arg15[%c0_19, %c0_20] : memref<5x160xf32, #tpu.memory_space<vmem>>, vector<5x160xf32>
    %c0_21 = arith.constant 0 : index
    %c0_22 = arith.constant 0 : index
    %c0_23 = arith.constant 0 : index
    %24 = vector.load %arg2[%c0_21, %c0_22, %c0_23] : memref<3x8x98xbf16, #tpu.memory_space<vmem>>, vector<1x8x98xbf16>
    %25 = vector.shape_cast %24 : vector<1x8x98xbf16> to vector<8x98xbf16>
    %c0_24 = arith.constant 0 : index
    %c0_25 = arith.constant 0 : index
    %26 = vector.load %arg4[%c0_24, %c0_25] : memref<98x160xbf16, #tpu.memory_space<vmem>>, vector<98x160xbf16>
    %cst_26 = arith.constant dense<0.000000e+00> : vector<8x160xf32>
    %27 = tpu.matmul %25, %26, %cst_26 {dimension_numbers = #tpu.dot_dimension_numbers<[1], [0], [0], [1], [0, 0, 1, 1], [], []>} : vector<8x98xbf16>, vector<98x160xbf16>, vector<8x160xf32> -> vector<8x160xf32>
    %c0_27 = arith.constant 0 : index
    %c0_28 = arith.constant 0 : index
    %28 = vector.load %arg5[%c0_27, %c0_28] : memref<1x160xf32, #tpu.memory_space<vmem>>, vector<1x160xf32>
    %29 = vector.broadcast %28 : vector<1x160xf32> to vector<8x160xf32>
    %30 = arith.addf %27, %29 : vector<8x160xf32>
    %cst_29 = arith.constant 0.000000e+00 : f32
    %31 = vector.broadcast %cst_29 : f32 to vector<8x160xf32>
    %32 = arith.maximumf %30, %31 : vector<8x160xf32>
    %33 = arith.truncf %32 : vector<8x160xf32> to vector<8x160xbf16>
    %c0_30 = arith.constant 0 : index
    %c0_31 = arith.constant 0 : index
    %34 = vector.load %arg6[%c0_30, %c0_31] : memref<160x160xbf16, #tpu.memory_space<vmem>>, vector<160x160xbf16>
    %cst_32 = arith.constant dense<0.000000e+00> : vector<8x160xf32>
    %35 = tpu.matmul %33, %34, %cst_32 {dimension_numbers = #tpu.dot_dimension_numbers<[1], [0], [0], [1], [0, 0, 1, 1], [], []>} : vector<8x160xbf16>, vector<160x160xbf16>, vector<8x160xf32> -> vector<8x160xf32>
    %c0_33 = arith.constant 0 : index
    %c0_34 = arith.constant 0 : index
    %36 = vector.load %arg7[%c0_33, %c0_34] : memref<1x160xf32, #tpu.memory_space<vmem>>, vector<1x160xf32>
    %37 = vector.broadcast %36 : vector<1x160xf32> to vector<8x160xf32>
    %38 = arith.addf %35, %37 : vector<8x160xf32>
    %cst_35 = arith.constant 0.000000e+00 : f32
    %39 = vector.broadcast %cst_35 : f32 to vector<8x160xf32>
    %40 = arith.maximumf %38, %39 : vector<8x160xf32>
    %41 = arith.mulf %21, %40 : vector<8x160xf32>
    %cst_36 = arith.constant dense<0.000000e+00> : vector<8x5xf32>
    %42 = tpu.matmul %41, %22, %cst_36 {dimension_numbers = #tpu.dot_dimension_numbers<[1], [0], [0], [1], [0, 0, 1, 1], [], []>} : vector<8x160xf32>, vector<160x5xf32>, vector<8x5xf32> -> vector<8x5xf32>
    %c1 = arith.constant 1 : index
    %c0_37 = arith.constant 0 : index
    %c0_38 = arith.constant 0 : index
    %43 = vector.load %arg2[%c1, %c0_37, %c0_38] : memref<3x8x98xbf16, #tpu.memory_space<vmem>>, vector<1x8x98xbf16>
    %44 = vector.shape_cast %43 : vector<1x8x98xbf16> to vector<8x98xbf16>
    %c0_39 = arith.constant 0 : index
    %c0_40 = arith.constant 0 : index
    %45 = vector.load %arg4[%c0_39, %c0_40] : memref<98x160xbf16, #tpu.memory_space<vmem>>, vector<98x160xbf16>
    %cst_41 = arith.constant dense<0.000000e+00> : vector<8x160xf32>
    %46 = tpu.matmul %44, %45, %cst_41 {dimension_numbers = #tpu.dot_dimension_numbers<[1], [0], [0], [1], [0, 0, 1, 1], [], []>} : vector<8x98xbf16>, vector<98x160xbf16>, vector<8x160xf32> -> vector<8x160xf32>
    %c0_42 = arith.constant 0 : index
    %c0_43 = arith.constant 0 : index
    %47 = vector.load %arg5[%c0_42, %c0_43] : memref<1x160xf32, #tpu.memory_space<vmem>>, vector<1x160xf32>
    %48 = vector.broadcast %47 : vector<1x160xf32> to vector<8x160xf32>
    %49 = arith.addf %46, %48 : vector<8x160xf32>
    %cst_44 = arith.constant 0.000000e+00 : f32
    %50 = vector.broadcast %cst_44 : f32 to vector<8x160xf32>
    %51 = arith.maximumf %49, %50 : vector<8x160xf32>
    %52 = arith.truncf %51 : vector<8x160xf32> to vector<8x160xbf16>
    %c0_45 = arith.constant 0 : index
    %c0_46 = arith.constant 0 : index
    %53 = vector.load %arg6[%c0_45, %c0_46] : memref<160x160xbf16, #tpu.memory_space<vmem>>, vector<160x160xbf16>
    %cst_47 = arith.constant dense<0.000000e+00> : vector<8x160xf32>
    %54 = tpu.matmul %52, %53, %cst_47 {dimension_numbers = #tpu.dot_dimension_numbers<[1], [0], [0], [1], [0, 0, 1, 1], [], []>} : vector<8x160xbf16>, vector<160x160xbf16>, vector<8x160xf32> -> vector<8x160xf32>
    %c0_48 = arith.constant 0 : index
    %c0_49 = arith.constant 0 : index
    %55 = vector.load %arg7[%c0_48, %c0_49] : memref<1x160xf32, #tpu.memory_space<vmem>>, vector<1x160xf32>
    %56 = vector.broadcast %55 : vector<1x160xf32> to vector<8x160xf32>
    %57 = arith.addf %54, %56 : vector<8x160xf32>
    %cst_50 = arith.constant 0.000000e+00 : f32
    %58 = vector.broadcast %cst_50 : f32 to vector<8x160xf32>
    %59 = arith.maximumf %57, %58 : vector<8x160xf32>
    %60 = arith.mulf %21, %59 : vector<8x160xf32>
    %cst_51 = arith.constant dense<0.000000e+00> : vector<8x5xf32>
    %61 = tpu.matmul %60, %22, %cst_51 {dimension_numbers = #tpu.dot_dimension_numbers<[1], [0], [0], [1], [0, 0, 1, 1], [], []>} : vector<8x160xf32>, vector<160x5xf32>, vector<8x5xf32> -> vector<8x5xf32>
    %c2 = arith.constant 2 : index
    %c0_52 = arith.constant 0 : index
    %c0_53 = arith.constant 0 : index
    %62 = vector.load %arg2[%c2, %c0_52, %c0_53] : memref<3x8x98xbf16, #tpu.memory_space<vmem>>, vector<1x8x98xbf16>
    %63 = vector.shape_cast %62 : vector<1x8x98xbf16> to vector<8x98xbf16>
    %c0_54 = arith.constant 0 : index
    %c0_55 = arith.constant 0 : index
    %64 = vector.load %arg4[%c0_54, %c0_55] : memref<98x160xbf16, #tpu.memory_space<vmem>>, vector<98x160xbf16>
    %cst_56 = arith.constant dense<0.000000e+00> : vector<8x160xf32>
    %65 = tpu.matmul %63, %64, %cst_56 {dimension_numbers = #tpu.dot_dimension_numbers<[1], [0], [0], [1], [0, 0, 1, 1], [], []>} : vector<8x98xbf16>, vector<98x160xbf16>, vector<8x160xf32> -> vector<8x160xf32>
    %c0_57 = arith.constant 0 : index
    %c0_58 = arith.constant 0 : index
    %66 = vector.load %arg5[%c0_57, %c0_58] : memref<1x160xf32, #tpu.memory_space<vmem>>, vector<1x160xf32>
    %67 = vector.broadcast %66 : vector<1x160xf32> to vector<8x160xf32>
    %68 = arith.addf %65, %67 : vector<8x160xf32>
    %cst_59 = arith.constant 0.000000e+00 : f32
    %69 = vector.broadcast %cst_59 : f32 to vector<8x160xf32>
    %70 = arith.maximumf %68, %69 : vector<8x160xf32>
    %71 = arith.truncf %70 : vector<8x160xf32> to vector<8x160xbf16>
    %c0_60 = arith.constant 0 : index
    %c0_61 = arith.constant 0 : index
    %72 = vector.load %arg6[%c0_60, %c0_61] : memref<160x160xbf16, #tpu.memory_space<vmem>>, vector<160x160xbf16>
    %cst_62 = arith.constant dense<0.000000e+00> : vector<8x160xf32>
    %73 = tpu.matmul %71, %72, %cst_62 {dimension_numbers = #tpu.dot_dimension_numbers<[1], [0], [0], [1], [0, 0, 1, 1], [], []>} : vector<8x160xbf16>, vector<160x160xbf16>, vector<8x160xf32> -> vector<8x160xf32>
    %c0_63 = arith.constant 0 : index
    %c0_64 = arith.constant 0 : index
    %74 = vector.load %arg7[%c0_63, %c0_64] : memref<1x160xf32, #tpu.memory_space<vmem>>, vector<1x160xf32>
    %75 = vector.broadcast %74 : vector<1x160xf32> to vector<8x160xf32>
    %76 = arith.addf %73, %75 : vector<8x160xf32>
    %cst_65 = arith.constant 0.000000e+00 : f32
    %77 = vector.broadcast %cst_65 : f32 to vector<8x160xf32>
    %78 = arith.maximumf %76, %77 : vector<8x160xf32>
    %79 = arith.mulf %21, %78 : vector<8x160xf32>
    %cst_66 = arith.constant dense<0.000000e+00> : vector<8x5xf32>
    %80 = tpu.matmul %79, %22, %cst_66 {dimension_numbers = #tpu.dot_dimension_numbers<[1], [0], [0], [1], [0, 0, 1, 1], [], []>} : vector<8x160xf32>, vector<160x5xf32>, vector<8x5xf32> -> vector<8x5xf32>
    %81 = arith.maximumf %42, %61 : vector<8x5xf32>
    %82 = arith.maximumf %81, %80 : vector<8x5xf32>
    %83 = arith.subf %42, %82 : vector<8x5xf32>
    %84 = math.exp %83 : vector<8x5xf32>
    %85 = arith.subf %61, %82 : vector<8x5xf32>
    %86 = math.exp %85 : vector<8x5xf32>
    %87 = arith.subf %80, %82 : vector<8x5xf32>
    %88 = math.exp %87 : vector<8x5xf32>
    %89 = arith.addf %84, %86 : vector<8x5xf32>
    %90 = arith.addf %89, %88 : vector<8x5xf32>
    %cst_67 = arith.constant 1.000000e+00 : f32
    %91 = vector.broadcast %cst_67 : f32 to vector<8x5xf32>
    %92 = arith.divf %91, %90 : vector<8x5xf32>
    %93 = arith.mulf %84, %92 : vector<8x5xf32>
    %cst_68 = arith.constant dense<0.000000e+00> : vector<8x160xf32>
    %94 = tpu.matmul %93, %23, %cst_68 {dimension_numbers = #tpu.dot_dimension_numbers<[1], [0], [0], [1], [0, 0, 1, 1], [], []>} : vector<8x5xf32>, vector<5x160xf32>, vector<8x160xf32> -> vector<8x160xf32>
    %95 = arith.mulf %94, %40 : vector<8x160xf32>
    %96 = arith.mulf %86, %92 : vector<8x5xf32>
    %cst_69 = arith.constant dense<0.000000e+00> : vector<8x160xf32>
    %97 = tpu.matmul %96, %23, %cst_69 {dimension_numbers = #tpu.dot_dimension_numbers<[1], [0], [0], [1], [0, 0, 1, 1], [], []>} : vector<8x5xf32>, vector<5x160xf32>, vector<8x160xf32> -> vector<8x160xf32>
    %98 = arith.mulf %97, %59 : vector<8x160xf32>
    %99 = arith.addf %95, %98 : vector<8x160xf32>
    %100 = arith.mulf %88, %92 : vector<8x5xf32>
    %cst_70 = arith.constant dense<0.000000e+00> : vector<8x160xf32>
    %101 = tpu.matmul %100, %23, %cst_70 {dimension_numbers = #tpu.dot_dimension_numbers<[1], [0], [0], [1], [0, 0, 1, 1], [], []>} : vector<8x5xf32>, vector<5x160xf32>, vector<8x160xf32> -> vector<8x160xf32>
    %102 = arith.mulf %101, %78 : vector<8x160xf32>
    %103 = arith.addf %99, %102 : vector<8x160xf32>
    %104 = arith.truncf %15 : vector<8x160xf32> to vector<8x160xbf16>
    %c0_71 = arith.constant 0 : index
    %c0_72 = arith.constant 0 : index
    %105 = vector.load %arg10[%c0_71, %c0_72] : memref<160x128xbf16, #tpu.memory_space<vmem>>, vector<160x128xbf16>
    %cst_73 = arith.constant dense<0.000000e+00> : vector<8x128xf32>
    %106 = tpu.matmul %104, %105, %cst_73 {dimension_numbers = #tpu.dot_dimension_numbers<[1], [0], [0], [1], [0, 0, 1, 1], [], []>} : vector<8x160xbf16>, vector<160x128xbf16>, vector<8x128xf32> -> vector<8x128xf32>
    %107 = arith.truncf %103 : vector<8x160xf32> to vector<8x160xbf16>
    %c0_74 = arith.constant 0 : index
    %c0_75 = arith.constant 0 : index
    %108 = vector.load %arg11[%c0_74, %c0_75] : memref<160x128xbf16, #tpu.memory_space<vmem>>, vector<160x128xbf16>
    %cst_76 = arith.constant dense<0.000000e+00> : vector<8x128xf32>
    %109 = tpu.matmul %107, %108, %cst_76 {dimension_numbers = #tpu.dot_dimension_numbers<[1], [0], [0], [1], [0, 0, 1, 1], [], []>} : vector<8x160xbf16>, vector<160x128xbf16>, vector<8x128xf32> -> vector<8x128xf32>
    %110 = arith.addf %106, %109 : vector<8x128xf32>
    %c0_77 = arith.constant 0 : index
    %c0_78 = arith.constant 0 : index
    %111 = vector.load %arg3[%c0_77, %c0_78] : memref<8x1xbf16, #tpu.memory_space<vmem>>, vector<8x1xbf16>
    %c0_79 = arith.constant 0 : index
    %c0_80 = arith.constant 0 : index
    %112 = vector.load %arg12[%c0_79, %c0_80] : memref<1x128xbf16, #tpu.memory_space<vmem>>, vector<1x128xbf16>
    %cst_81 = arith.constant dense<0.000000e+00> : vector<8x128xf32>
    %113 = tpu.matmul %111, %112, %cst_81 {dimension_numbers = #tpu.dot_dimension_numbers<[1], [0], [0], [1], [0, 0, 1, 1], [], []>} : vector<8x1xbf16>, vector<1x128xbf16>, vector<8x128xf32> -> vector<8x128xf32>
    %114 = arith.addf %110, %113 : vector<8x128xf32>
    %c0_82 = arith.constant 0 : index
    %c0_83 = arith.constant 0 : index
    %115 = vector.load %arg13[%c0_82, %c0_83] : memref<1x128xf32, #tpu.memory_space<vmem>>, vector<1x128xf32>
    %116 = vector.broadcast %115 : vector<1x128xf32> to vector<8x128xf32>
    %117 = arith.addf %114, %116 : vector<8x128xf32>
    %c0_84 = arith.constant 0 : index
    %c0_85 = arith.constant 0 : index
    %118 = vector.load %arg16[%c0_84, %c0_85] : memref<8x128xf32, #tpu.memory_space<vmem>>, vector<8x128xf32>
    tpu.vector_store %arg16[%c0_84, %c0_85], %117 {strides = array<i32>} : memref<8x128xf32, #tpu.memory_space<vmem>>, vector<8x128xf32>,
    return
  }
  func.func @transform_0(%arg0: i32) -> (i32, i32) {
    %c0_i32 = arith.constant 0 : i32
    %c0_i32_0 = arith.constant 0 : i32
    return %arg0, %c0_i32 : i32, i32
  }
  func.func @transform_1(%arg0: i32) -> (i32, i32, i32) {
    %c0_i32 = arith.constant 0 : i32
    %c0_i32_0 = arith.constant 0 : i32
    %c0_i32_1 = arith.constant 0 : i32
    return %c0_i32, %arg0, %c0_i32_0 : i32, i32, i32
  }
  func.func @transform_2(%arg0: i32) -> (i32, i32) {
    %c0_i32 = arith.constant 0 : i32
    %c0_i32_0 = arith.constant 0 : i32
    return %arg0, %c0_i32 : i32, i32
  }
  func.func @transform_3(%arg0: i32) -> (i32, i32) {
    %c0_i32 = arith.constant 0 : i32
    %c0_i32_0 = arith.constant 0 : i32
    %c0_i32_1 = arith.constant 0 : i32
    return %c0_i32, %c0_i32_0 : i32, i32
  }
  func.func @transform_4(%arg0: i32) -> (i32, i32) {
    %c0_i32 = arith.constant 0 : i32
    %c0_i32_0 = arith.constant 0 : i32
    %c0_i32_1 = arith.constant 0 : i32
    return %c0_i32, %c0_i32_0 : i32, i32
  }
  func.func @transform_5(%arg0: i32) -> (i32, i32) {
    %c0_i32 = arith.constant 0 : i32
    %c0_i32_0 = arith.constant 0 : i32
    %c0_i32_1 = arith.constant 0 : i32
    return %c0_i32, %c0_i32_0 : i32, i32
  }
  func.func @transform_6(%arg0: i32) -> (i32, i32) {
    %c0_i32 = arith.constant 0 : i32
    %c0_i32_0 = arith.constant 0 : i32
    %c0_i32_1 = arith.constant 0 : i32
    return %c0_i32, %c0_i32_0 : i32, i32
  }
  func.func @transform_7(%arg0: i32) -> (i32, i32) {
    %c0_i32 = arith.constant 0 : i32
    %c0_i32_0 = arith.constant 0 : i32
    %c0_i32_1 = arith.constant 0 : i32
    return %c0_i32, %c0_i32_0 : i32, i32
  }
  func.func @transform_8(%arg0: i32) -> (i32, i32) {
    %c0_i32 = arith.constant 0 : i32
    %c0_i32_0 = arith.constant 0 : i32
    %c0_i32_1 = arith.constant 0 : i32
    return %c0_i32, %c0_i32_0 : i32, i32
  }
  func.func @transform_9(%arg0: i32) -> (i32, i32) {
    %c0_i32 = arith.constant 0 : i32
    %c0_i32_0 = arith.constant 0 : i32
    %c0_i32_1 = arith.constant 0 : i32
    return %c0_i32, %c0_i32_0 : i32, i32
  }
  func.func @transform_10(%arg0: i32) -> (i32, i32) {
    %c0_i32 = arith.constant 0 : i32
    %c0_i32_0 = arith.constant 0 : i32
    %c0_i32_1 = arith.constant 0 : i32
    return %c0_i32, %c0_i32_0 : i32, i32
  }
  func.func @transform_11(%arg0: i32) -> (i32, i32) {
    %c0_i32 = arith.constant 0 : i32
    %c0_i32_0 = arith.constant 0 : i32
    %c0_i32_1 = arith.constant 0 : i32
    return %c0_i32, %c0_i32_0 : i32, i32
  }
  func.func @transform_12(%arg0: i32) -> (i32, i32) {
    %c0_i32 = arith.constant 0 : i32
    %c0_i32_0 = arith.constant 0 : i32
    %c0_i32_1 = arith.constant 0 : i32
    return %c0_i32, %c0_i32_0 : i32, i32
  }
  func.func @transform_13(%arg0: i32) -> (i32, i32) {
    %c0_i32 = arith.constant 0 : i32
    %c0_i32_0 = arith.constant 0 : i32
    %c0_i32_1 = arith.constant 0 : i32
    return %c0_i32, %c0_i32_0 : i32, i32
  }
  func.func @transform_14(%arg0: i32) -> (i32, i32) {
    %c0_i32 = arith.constant 0 : i32
    %c0_i32_0 = arith.constant 0 : i32
    %c0_i32_1 = arith.constant 0 : i32
    return %c0_i32, %c0_i32_0 : i32, i32
  }
  func.func @transform_15(%arg0: i32) -> (i32, i32) {
    %c0_i32 = arith.constant 0 : i32
    %c0_i32_0 = arith.constant 0 : i32
    return %arg0, %c0_i32 : i32, i32
  }
}

</mosaic_0001>

<bundles_post_ra>
// kernel: tpu_custom_call.1
= control target key start
LH: loop header
LB: loop body
LE: loop exit
PB: predicated region body
PF: predicated region fallthrough
CT: control target
= control target key end

     0   :  { %20 = vsyncpa [#allocation3], 0  ;;  %s2958_s0 = inlined_call_operand.hbm [shape: bf16[8,98], index: 0, kind: input, shape index: {}]   ;;  %s2959_s1 = inlined_call_operand.vmem [shape: bf16[3,8,98], index: 1, kind: input, shape index: {}]   ;;  %s2960_s2 = inlined_call_operand.vmem [shape: bf16[8,1], index: 2, kind: input, shape index: {}]   ;;  %s2961_s3 = inlined_call_operand.vmem [shape: bf16[98,160], index: 3, kind: input, shape index: {}]   ;;  %s2962_s4 = inlined_call_operand.vmem [shape: f32[1,160], index: 4, kind: input, shape index: {}]   ;;  %s2963_s5 = inlined_call_operand.vmem [shape: bf16[160,160], index: 5, kind: input, shape index: {}]   ;;  %s2964_s6 = inlined_call_operand.hbm [shape: f32[1,160], index: 6, kind: input, shape index: {}]   ;;  %s2965_s7 = inlined_call_operand.vmem [shape: bf16[160,160], index: 7, kind: input, shape index: {}]   ;;  %s2966_s8 = inlined_call_operand.vmem [shape: f32[1,160], index: 8, kind: input, shape index: {}]   ;;  %s2967_s9 = inlined_call_operand.hbm [shape: bf16[160,128], index: 9, kind: input, shape index: {}]   ;;  %s2968_s10 = inlined_call_operand.hbm [shape: bf16[160,128], index: 10, kind: input, shape index: {}]   ;;  %s2969_s11 = inlined_call_operand.vmem [shape: bf16[1,128], index: 11, kind: input, shape index: {}]   ;;  %s2970_s12 = inlined_call_operand.vmem [shape: f32[1,128], index: 12, kind: input, shape index: {}]   ;;  %s2971_s13 = inlined_call_operand.vmem [shape: f32[160,5], index: 13, kind: input, shape index: {}]   ;;  %s2972_s14 = inlined_call_operand.vmem [shape: f32[5,160], index: 14, kind: input, shape index: {}]   ;;  %s2973_s15 = inlined_call_operand.hbm [shape: f32[8,128], index: 15, kind: output, shape index: {}]  }
   0x1   :  { %21 = vsyncpa [#allocation6], 0 }
   0x2   :  { %22 = vsyncpa [#allocation9], 0  ;;  %s50_s20 = sshll.u32 %s2964_s6, 4  ;;  %s51_s20 = int_to_ptr.hbm [resolvable:$true] %s50_s20 }
   0x3   :  { %23 = vsyncpa [#allocation4], 0  ;;  %s2024_s21 = smov [#allocation5]   ;;  %s29_s25 = sshll.u32 %s2958_s0, 4  ;;  %s30_s25 = int_to_ptr.hbm [resolvable:$true] %s29_s25 }
   0x4   :  { %s52_s22 = sshll.u32 %s2024_s21, 4  ;;  %s2025_s26 = smov [#allocation2]   ;;  %s53_s22 = int_to_ptr.vmem [resolvable:$true] %s52_s22 }
   0x5   :  { %55 = dma.hbm_to_vmem [thread:$0]  %s51_s20, 32, %s53_s22, [#allocation6]  }
   0x6   :  { %s31_s27 = sshll.u32 %s2025_s26, 4  ;;  %s64_s30 = sshll.u32 %s2967_s9, 4  ;;  %s32_s27 = int_to_ptr.vmem [resolvable:$true] %s31_s27  ;;  %s65_s30 = int_to_ptr.hbm [resolvable:$true] %s64_s30 }
   0x7   :  { %34 = dma.hbm_to_vmem [thread:$0]  %s30_s25, 64, %s32_s27, [#allocation3]  }
   0x8   :  { %s2026_s6 = smov [#allocation7]   ;;  %s77_s19 = sshll.u32 %s2968_s10, 4  ;;  %s78_s19 = int_to_ptr.hbm [resolvable:$true] %s77_s19 }
   0x9   :  { %s66_s16 = sshll.u32 %s2026_s6, 4  ;;  %s2027_s21 = smov 64   ;;  %s67_s16 = int_to_ptr.vmem [resolvable:$true] %s66_s16 }
   0xa   :  { %s2028_s0 = smov 4   ;;  %s2029_s20 = smov [#allocation8]  }
   0xb   :  { %72 = dma.hbm_to_vmem [thread:$0]  %s65_s30, 1280, %s67_s16, [#allocation6], %s2027_s21, %s2027_s21, %s2028_s0  }
   0xc   :  { %s79_s22 = sshll.u32 %s2029_s20, 4  ;;  %s80_s22 = int_to_ptr.vmem [resolvable:$true] %s79_s22 }
   0xd   :  { %85 = dma.hbm_to_vmem [thread:$0]  %s78_s19, 1280, %s80_s22, [#allocation9], %s2027_s21, %s2027_s21, %s2028_s0  }
   0xe   :  { %2016 = dma.done.wait [#allocation3], 64  }
   0xf   :  { %2017 = vsyncadd [#allocation3], 4294967232 }
  0x10   :  { %2018 = dma.done.wait [#allocation6], 1312  }
  0x11   :  { %2019 = vsyncadd [#allocation6], 4294965984 }
  0x12   :  { %2020 = dma.done.wait [#allocation9], 1280  }
  0x13   :  { %2021 = vsyncadd [#allocation9], 4294966016  ;;  %v124_v0 = vld [vmem:[%s2961_s3 + $0x60] sm:$0x11]  ;;  %vm200_vm0 = vcmask 1040384   ;;  %vm196_vm1 = vcmask 801792  }
  0x14   :  { %v168_v1 = vunpack.c.l.b16 %v124_v0  ;;  %v169_v2 = vunpack.c.h.b16 %v124_v0  ;;  %v1523_v3 = vld [vmem:[%s2961_s3 + $0x50] sm:$0xf]  ;;  %v1818_v6 = vld [vmem:[%s2961_s3 + $0x54] sm:$0xf0]  ;;  %v1817_v7 = vld [vmem:[%s2961_s3 + $0x54] sm:$0xf] }
  0x15   :  { %v1525_v8 = vld [vmem:[%s2961_s3 + $0x58] sm:$0xf0]  ;;  %v2147_v11 = vor.u32 %v1818_v6, %v1523_v3  ;;  %v1515_v13 = vld [vmem:[%s2961_s3 + $0x40] sm:$0xf]  ;;  %v1816_v14 = vld [vmem:[%s2961_s3 + $0x44] sm:$0xf0] }
  0x16   :  { %v182_v4 = vpack.c.b16 %v168_v1, %v168_v1  ;;  %v183_v5 = vpack.c.b16 %v169_v2, %v169_v2  ;;  %v2149_v12 = vor.u32 %v1817_v7, %v1525_v8  ;;  %v1815_v15 = vld [vmem:[%s2961_s3 + $0x44] sm:$0xf]  ;;  %v1517_v16 = vld [vmem:[%s2961_s3 + $0x48] sm:$0xf0]  ;;  %v1507_v17 = vld [vmem:[%s2961_s3 + $0x30] sm:$0xf]  ;;  %v2177_v21 = vor.u32 %v1816_v14, %v1515_v13 }
  0x17   :  { %v1589_v18 = vld [vmem:[%s2963_s5 + $0x70] sm:$0xf]  ;;  %v1834_v19 = vld [vmem:[%s2963_s5 + $0x74] sm:$0xf0]  ;;  %v1581_v20 = vld [vmem:[%s2963_s5 + $0x60] sm:$0xf]  ;;  %v2179_v22 = vor.u32 %v1815_v15, %v1517_v16 }
  0x18   :  { %v2140_v9 = vsel %vm200_vm0, %v182_v4, 0  ;;  %v2143_v10 = vsel %vm200_vm0, %v183_v5, 0  ;;  %v1814_v23 = vld [vmem:[%s2961_s3 + $0x34] sm:$0xf0]  ;;  %v1813_v24 = vld [vmem:[%s2961_s3 + $0x34] sm:$0xf]  ;;  %v2187_v25 = vor.u32 %v1834_v19, %v1589_v18 }
  0x19   :  { %208 = vmatpush.bf16.msra.mxu0 %v2140_v9  ;;  %221 = vmatpush.bf16.msra.mxu1 %v2143_v10  ;;  %v1832_v26 = vld [vmem:[%s2963_s5 + $0x64] sm:$0xf0]  ;;  %v1509_v27 = vld [vmem:[%s2961_s3 + $0x38] sm:$0xf0]  ;;  %v1605_v28 = vld [vmem:[%s2963_s5 + $0x90] sm:$0xf]  ;;  %v2223_v37 = vor.u32 %v1814_v23, %v1507_v17 }
  0x1a   :  { %v1838_v29 = vld [vmem:[%s2963_s5 + $0x94] sm:$0xf0]  ;;  %367 = vmatpush.bf16.msra.mxu2 %v2187_v25  ;;  %v2202_v30 = vor.u32 %v1832_v26, %v1581_v20  ;;  %v1597_v32 = vld [vmem:[%s2963_s5 + $0x80] sm:$0xf]  ;;  %v1836_v33 = vld [vmem:[%s2963_s5 + $0x84] sm:$0xf0]  ;;  %v2225_v38 = vor.u32 %v1813_v24, %v1509_v27 }
  0x1b   :  { %v2204_v31 = vor.u32 %v1838_v29, %v1605_v28  ;;  %v1573_v34 = vld [vmem:[%s2963_s5 + $0x50] sm:$0xf]  ;;  %v1830_v35 = vld [vmem:[%s2963_s5 + $0x54] sm:$0xf0]  ;;  %v1833_v36 = vld [vmem:[%s2963_s5 + $0x74] sm:$0xf]  ;;  %v2243_v44 = vor.u32 %v1836_v33, %v1597_v32 }
  0x1c   :  { %v1499_v39 = vld [vmem:[%s2961_s3 + $0x20] sm:$0xf]  ;;  %v1591_v40 = vld [vmem:[%s2963_s5 + $0x78] sm:$0xf0]  ;;  %v1812_v41 = vld [vmem:[%s2961_s3 + $0x24] sm:$0xf0]  ;;  %v2246_v45 = vor.u32 %v1830_v35, %v1573_v34 }
  0x1d   :  { %209 = vmatpush.bf16.msra.mxu0 %v2147_v11  ;;  %222 = vmatpush.bf16.msra.mxu1 %v2149_v12  ;;  %v1811_v42 = vld [vmem:[%s2961_s3 + $0x24] sm:$0xf]  ;;  %v1501_v43 = vld [vmem:[%s2961_s3 + $0x28] sm:$0xf0]  ;;  %v1565_v46 = vld [vmem:[%s2963_s5 + $0x40] sm:$0xf]  ;;  %v2251_v47 = vor.u32 %v1833_v36, %v1591_v40  ;;  %v2264_v51 = vor.u32 %v1812_v41, %v1499_v39 }
  0x1e   :  { %386 = vmatpush.bf16.msra.mxu3 %v2204_v31  ;;  %368 = vmatpush.bf16.msra.mxu2 %v2202_v30  ;;  %v1828_v48 = vld [vmem:[%s2963_s5 + $0x44] sm:$0xf0]  ;;  %v1831_v49 = vld [vmem:[%s2963_s5 + $0x64] sm:$0xf]  ;;  %v1583_v50 = vld [vmem:[%s2963_s5 + $0x68] sm:$0xf0]  ;;  %v2266_v52 = vor.u32 %v1811_v42, %v1501_v43 }
  0x1f   :  { %v1491_v53 = vld [vmem:[%s2961_s3 + $0x10] sm:$0xf]  ;;  %v1810_v54 = vld [vmem:[%s2961_s3 + $0x14] sm:$0xf0]  ;;  %v1809_v55 = vld [vmem:[%s2961_s3 + $0x14] sm:$0xf]  ;;  %v2282_v57 = vor.u32 %v1828_v48, %v1565_v46  ;;  %v2285_v58 = vor.u32 %v1831_v49, %v1583_v50 }
  0x20   :  { %v1493_v56 = vld [vmem:[%s2961_s3 + $0x18] sm:$0xf0]  ;;  %v1557_v59 = vld [vmem:[%s2963_s5 + $0x30] sm:$0xf]  ;;  %v1826_v60 = vld [vmem:[%s2963_s5 + $0x34] sm:$0xf0]  ;;  %v2295_v61 = vor.u32 %v1810_v54, %v1491_v53 }
  0x21   :  { %210 = vmatpush.bf16.msra.mxu0 %v2177_v21  ;;  %223 = vmatpush.bf16.msra.mxu1 %v2179_v22  ;;  %v2297_v62 = vor.u32 %v1809_v55, %v1493_v56  ;;  %v1483_v63 = vld [vmem:[%s2961_s3] sm:$0xf]  ;;  %v1808_v0 = vld [vmem:[%s2961_s3 + $0x4] sm:$0xf0]  ;;  %v1807_v1 = vld [vmem:[%s2961_s3 + $0x4] sm:$0xf]  ;;  %v2312_v3 = vor.u32 %v1826_v60, %v1557_v59 }
  0x22   :  { %387 = vmatpush.bf16.msra.mxu3 %v2243_v44  ;;  %369 = vmatpush.bf16.msra.mxu2 %v2246_v45  ;;  %v1485_v2 = vld [vmem:[%s2961_s3 + $0x8] sm:$0xf0]  ;;  %v1549_v4 = vld [vmem:[%s2963_s5 + $0x20] sm:$0xf]  ;;  %v1824_v5 = vld [vmem:[%s2963_s5 + $0x24] sm:$0xf0]  ;;  %v2323_v6 = vor.u32 %v1808_v0, %v1483_v63 }
  0x23   :  { %v2325_v7 = vor.u32 %v1807_v1, %v1485_v2  ;;  %v2328_v8 = vor.u32 %v1824_v5, %v1549_v4  ;;  %v111_v13 = vld [vmem:[#allocation2] sm:$0xf]  ;;  %v1541_v14 = vld [vmem:[%s2963_s5 + $0x10] sm:$0xf]  ;;  %v1822_v15 = vld [vmem:[%s2963_s5 + $0x14] sm:$0xf0] }
  0x24   :  { %v1829_v16 = vld [vmem:[%s2963_s5 + $0x54] sm:$0xf]  ;;  %v2344_v17 = vor.u32 %v1822_v15, %v1541_v14  ;;  %v1575_v18 = vld [vmem:[%s2963_s5 + $0x58] sm:$0xf0]  ;;  %v1533_v26 = vld [vmem:[%s2963_s5] sm:$0xf] }
  0x25   :  { %211 = vmatpush.bf16.msra.mxu0 %v2223_v37  ;;  %224 = vmatpush.bf16.msra.mxu1 %v2225_v38  ;;  %v1837_v19 = vld [vmem:[%s2963_s5 + $0x94] sm:$0xf]  ;;  %v1607_v20 = vld [vmem:[%s2963_s5 + $0x98] sm:$0xf0]  ;;  %v2355_v23 = vor.u32 %v1829_v16, %v1575_v18  ;;  %v1820_v27 = vld [vmem:[%s2963_s5 + $0x4] sm:$0xf0] }
  0x26   :  { %393 = vmatpush.bf16.msrb.mxu3 %v2251_v47  ;;  %370 = vmatpush.bf16.msra.mxu2 %v2282_v57  ;;  %v2357_v24 = vor.u32 %v1837_v19, %v1607_v20  ;;  %v1827_v28 = vld [vmem:[%s2963_s5 + $0x44] sm:$0xf]  ;;  %v2371_v29 = vor.u32 %v1820_v27, %v1533_v26  ;;  %v1567_v32 = vld [vmem:[%s2963_s5 + $0x48] sm:$0xf0]  ;;  %v1825_v39 = vld [vmem:[%s2963_s5 + $0x34] sm:$0xf] }
  0x27   :  { %v1835_v33 = vld [vmem:[%s2963_s5 + $0x84] sm:$0xf]  ;;  %v1599_v34 = vld [vmem:[%s2963_s5 + $0x88] sm:$0xf0]  ;;  %v2382_v35 = vor.u32 %v1827_v28, %v1567_v32  ;;  %v1559_v40 = vld [vmem:[%s2963_s5 + $0x38] sm:$0xf0] }
  0x28   :  { %v2384_v36 = vor.u32 %v1835_v33, %v1599_v34  ;;  %v2395_v41 = vor.u32 %v1825_v39, %v1559_v40  ;;  %v1823_v42 = vld [vmem:[%s2963_s5 + $0x24] sm:$0xf]  ;;  %v1551_v43 = vld [vmem:[%s2963_s5 + $0x28] sm:$0xf0]  ;;  %v1821_v48 = vld [vmem:[%s2963_s5 + $0x14] sm:$0xf] }
  0x29   :  { %212 = vmatpush.bf16.msra.mxu0 %v2264_v51  ;;  %225 = vmatpush.bf16.msra.mxu1 %v2266_v52  ;;  %v2404_v46 = vor.u32 %v1823_v42, %v1551_v43  ;;  %v1543_v49 = vld [vmem:[%s2963_s5 + $0x18] sm:$0xf0]  ;;  %v1819_v53 = vld [vmem:[%s2963_s5 + $0x4] sm:$0xf]  ;;  %v1535_v54 = vld [vmem:[%s2963_s5 + $0x8] sm:$0xf0] }
  0x2a   :  { %394 = vmatpush.bf16.msrb.mxu3 %v2285_v58  ;;  %371 = vmatpush.bf16.msra.mxu2 %v2312_v3  ;;  %v2413_v50 = vor.u32 %v1821_v48, %v1543_v49  ;;  %v2422_v55 = vor.u32 %v1819_v53, %v1535_v54  ;;  %v1671_v56 = vld [vmem:[%s2965_s7 + $0x70] sm:$0xf]  ;;  %v1854_v59 = vld [vmem:[%s2965_s7 + $0x74] sm:$0xf0]  ;;  %v1663_v63 = vld [vmem:[%s2965_s7 + $0x60] sm:$0xf] }
  0x2b   :  { %v1672_v60 = vor.u32 %v1854_v59, %v1671_v56  ;;  %v1852_v0 = vld [vmem:[%s2965_s7 + $0x64] sm:$0xf0]  ;;  %v125_v1 = vld [vmem:[%s2962_s4] sm:$0x3]  ;;  %v1655_v4 = vld [vmem:[%s2965_s7 + $0x50] sm:$0xf] }
  0x2c   :  { %v1664_v2 = vor.u32 %v1852_v0, %v1663_v63  ;;  %v1850_v5 = vld [vmem:[%s2965_s7 + $0x54] sm:$0xf0]  ;;  %v2448_v14 = vperm.slane %v125_v1, 1  ;;  %v1647_v16 = vld [vmem:[%s2965_s7 + $0x40] sm:$0xf]  ;;  %vm363_vm2 = vcmask 261120  }
  0x2d   :  { %213 = vmatpush.bf16.msra.mxu0 %v2295_v61  ;;  %226 = vmatpush.bf16.msra.mxu1 %v2297_v62  ;;  %v1656_v15 = vor.u32 %v1850_v5, %v1655_v4  ;;  %v1848_v18 = vld [vmem:[%s2965_s7 + $0x44] sm:$0xf0]  ;;  %v1853_v28 = vld [vmem:[%s2965_s7 + $0x74] sm:$0xf]  ;;  %v1673_v32 = vld [vmem:[%s2965_s7 + $0x78] sm:$0xf0] }
  0x2e   :  { %372 = vmatpush.bf16.msra.mxu2 %v2328_v8  ;;  %395 = vmatpush.bf16.msrb.mxu3 %v2355_v23  ;;  %v1648_v33 = vor.u32 %v1848_v18, %v1647_v16  ;;  %v1676_v40 = vor.u32 %v1853_v28, %v1673_v32  ;;  %v1851_v48 = vld [vmem:[%s2965_s7 + $0x64] sm:$0xf]  ;;  %v1665_v49 = vld [vmem:[%s2965_s7 + $0x68] sm:$0xf0]  ;;  %v1849_v59 = vld [vmem:[%s2965_s7 + $0x54] sm:$0xf] }
  0x2f   :  { %v1668_v56 = vor.u32 %v1851_v48, %v1665_v49  ;;  %v1847_v0 = vld [vmem:[%s2965_s7 + $0x44] sm:$0xf]  ;;  %v1639_v4 = vld [vmem:[%s2965_s7 + $0x30] sm:$0xf]  ;;  %v1846_v5 = vld [vmem:[%s2965_s7 + $0x34] sm:$0xf0] }
  0x30   :  { %v1640_v16 = vor.u32 %v1846_v5, %v1639_v4  ;;  %v1641_v18 = vld [vmem:[%s2965_s7 + $0x38] sm:$0xf0]  ;;  %v1633_v32 = vld [vmem:[%s2965_s7 + $0x28] sm:$0xf0]  ;;  %v1615_v49 = vld [vmem:[%s2965_s7] sm:$0xf] }
  0x31   :  { %214 = vmatpush.bf16.msra.mxu0 %v2323_v6  ;;  %227 = vmatpush.bf16.msra.mxu1 %v2325_v7  ;;  %v1689_v4 = vld [vmem:[%s2965_s7 + $0x98] sm:$0xf0]  ;;  %vm1069_vm3 = vcmask 1044480   ;;  %vm1065_vm8 = vcmask 39936   ;;  %vm1433_vm9 = vcmask 7168   ;;  %s2031_s18 = smov [#allocation10]  }
  0x32   :  { %373 = vmatpush.bf16.msra.mxu2 %v2344_v17  ;;  %396 = vmatpush.bf16.msrb.mxu3 %v2382_v35  ;;  %s1467_s3 = sshll.u32 %s2031_s18, 4  ;;  %s1468_s3 = int_to_ptr.vmem [resolvable:$true] %s1467_s3 }
  0x34   :  { %1529 = vmatmul.msk.bf16.vlgmr.msra.gmra.mxu0 %vm196_vm1, %v111_v13  ;;  %1530 = vmatmul.msk.bf16.vlgmr.msra.gmra.mxu1 %vm196_vm1, %v111_v13  ;;  %v2446_v13 = vperm.slane %v125_v1, 0  ;;  %v1649_v1 = vld [vmem:[%s2965_s7 + $0x48] sm:$0xf0] }
  0x35   :  { %412 = vmatpush.bf16.msrb.mxu0 %v2357_v24  ;;  %552 = vmatpush.bf16.msrb.mxu1 %v1672_v60  ;;  %v1657_v60 = vld [vmem:[%s2965_s7 + $0x58] sm:$0xf0] }
  0x36   :  { %374 = vmatpush.bf16.msra.mxu2 %v2371_v29  ;;  %397 = vmatpush.bf16.msrb.mxu3 %v2395_v41  ;;  %v1660_v63 = vor.u32 %v1849_v59, %v1657_v60  ;;  %v1617_v59 = vld [vmem:[%s2965_s7 + $0x8] sm:$0xf0] }
  0x39   :  { %413 = vmatpush.bf16.msrb.mxu0 %v2384_v36  ;;  %553 = vmatpush.bf16.msrb.mxu1 %v1664_v2  ;;  %v1652_v2 = vor.u32 %v1847_v0, %v1649_v1  ;;  %v1858_v0 = vld [vmem:[%s2965_s7 + $0x94] sm:$0xf0]  ;;  %v1857_v1 = vld [vmem:[%s2965_s7 + $0x94] sm:$0xf] }
  0x3a   :  { %398 = vmatpush.bf16.msrb.mxu3 %v2404_v46  ;;  %v1692_v5 = vor.u32 %v1857_v1, %v1689_v4 }
  0x3d   :  { %554 = vmatpush.bf16.msrb.mxu1 %v1656_v15  ;;  %v1845_v15 = vld [vmem:[%s2965_s7 + $0x34] sm:$0xf]  ;;  %597 = vmatpush.bf16.msra.mxu0 %v1692_v5 }
  0x3e   :  { %399 = vmatpush.bf16.msrb.mxu3 %v2413_v50 }
  0x41   :  { %555 = vmatpush.bf16.msrb.mxu1 %v1648_v33 }
  0x42   :  { %400 = vmatpush.bf16.msrb.mxu3 %v2422_v55 }
  0x45   :  { %556 = vmatpush.bf16.msrb.mxu1 %v1640_v16  ;;  %v1856_v16 = vld [vmem:[%s2965_s7 + $0x84] sm:$0xf0] }
  0xb1   :  { %v216_v19 = vpop.f32.mrf.mxu0  ;;  %v229_v20 = vpop.f32.mrf.mxu1 }
  0xb2   :  { %v217_v26 = vadd.f32 %v216_v19, %v2446_v13  ;;  %v230_v27 = vadd.f32 %v229_v20, %v2448_v14  ;;  %v1644_v19 = vor.u32 %v1845_v15, %v1641_v18  ;;  %v1631_v20 = vld [vmem:[%s2965_s7 + $0x20] sm:$0xf]  ;;  %v1855_v18 = vld [vmem:[%s2965_s7 + $0x84] sm:$0xf] }
  0xb3   :  { %v1679_v15 = vld [vmem:[%s2965_s7 + $0x80] sm:$0xf] }
  0xb4   :  { %v233_v34 = vmax.f32 %v217_v26, 0.0  ;;  %v234_v39 = vmax.f32 %v230_v27, 0.0  ;;  %v1844_v26 = vld [vmem:[%s2965_s7 + $0x24] sm:$0xf0]  ;;  %v1843_v27 = vld [vmem:[%s2965_s7 + $0x24] sm:$0xf] }
  0xb5   :  { %v1632_v28 = vor.u32 %v1844_v26, %v1631_v20  ;;  %v1636_v33 = vor.u32 %v1843_v27, %v1633_v32  ;;  %v1681_v20 = vld [vmem:[%s2965_s7 + $0x88] sm:$0xf0]  ;;  %v257_v27 = vld [vmem:[#allocation5] sm:$0x3] }
  0xb6   :  { %v236_v42 = vpack.c.bf16 %v234_v39, %v234_v39  ;;  %v235_v43 = vpack.c.bf16 %v233_v34, %v233_v34  ;;  %v1623_v34 = vld [vmem:[%s2965_s7 + $0x10] sm:$0xf]  ;;  %v1842_v39 = vld [vmem:[%s2965_s7 + $0x14] sm:$0xf0]  ;;  %v1684_v26 = vor.u32 %v1855_v18, %v1681_v20  ;;  %v2572_v32 = vperm.slane %v257_v27, 0 }
  0xb7   :  { %557 = vmatpush.bf16.msrb.mxu1 %v1632_v28 }
  0xb8   :  { %375 = vmatmul.bf16.vlgmr.msra.gmra.mxu2 %v235_v43  ;;  %1611 = vmatmul.msk.bf16.vlgmr.msra.gmra.mxu3 %vm363_vm2, %v236_v42 }
  0xb9   :  { %1612 = vmatmul.msk.bf16.vlgmr.msrb.gmra.mxu0 %vm363_vm2, %v236_v42  ;;  %v231_v53 = vpop.f32.mrf.mxu1  ;;  %v218_v54 = vpop.f32.mrf.mxu0  ;;  %578 = vmatpush.bf16.msra.mxu3 %v1676_v40  ;;  %v1841_v40 = vld [vmem:[%s2965_s7 + $0x14] sm:$0xf]  ;;  %v1624_v42 = vor.u32 %v1842_v39, %v1623_v34 }
  0xba   :  { %v1840_v53 = vld [vmem:[%s2965_s7 + $0x4] sm:$0xf0]  ;;  %v1839_v54 = vld [vmem:[%s2965_s7 + $0x4] sm:$0xf]  ;;  %598 = vmatpush.bf16.msra.mxu0 %v1684_v26 }
  0xbb   :  { %558 = vmatpush.bf16.msrb.mxu1 %v1624_v42  ;;  %v1620_v60 = vor.u32 %v1839_v54, %v1617_v59  ;;  %v2588_v54 = vperm.slane %v257_v27, 1 }
  0xbd   :  { %579 = vmatpush.bf16.msra.mxu3 %v1668_v56  ;;  %v1616_v56 = vor.u32 %v1840_v53, %v1615_v49 }
  0xbe   :  { %644 = vmatpush.bf16.msrb.mxu0 %v2143_v10 }
  0xbf   :  { %559 = vmatpush.bf16.msrb.mxu1 %v1616_v56 }
  0xc1   :  { %580 = vmatpush.bf16.msra.mxu3 %v1660_v63  ;;  %v1687_v63 = vld [vmem:[%s2965_s7 + $0x90] sm:$0xf] }
  0xc2   :  { %645 = vmatpush.bf16.msrb.mxu0 %v2149_v12 }
  0xc3   :  { %663 = vmatpush.bf16.msra.mxu1 %v2187_v25 }
  0xc5   :  { %581 = vmatpush.bf16.msra.mxu3 %v1652_v2  ;;  %v1688_v2 = vor.u32 %v1858_v0, %v1687_v63 }
  0xc6   :  { %646 = vmatpush.bf16.msrb.mxu0 %v2179_v22 }
  0xc7   :  { %571 = vmatpush.bf16.msrb.mxu2 %v1688_v2  ;;  %664 = vmatpush.bf16.msra.mxu1 %v2202_v30  ;;  %v626_v2 = vld [vmem:[%s2959_s1] sm:$0xf] }
  0xc8   :  { %401 = vmatmul.bf16.vlgmr.msrb.gmra.mxu3 %v235_v43  ;;  %v1625_v43 = vld [vmem:[%s2965_s7 + $0x18] sm:$0xf0] }
  0xc9   :  { %582 = vmatpush.bf16.msra.mxu3 %v1644_v19  ;;  %v1628_v48 = vor.u32 %v1841_v40, %v1625_v43  ;;  %v1680_v19 = vor.u32 %v1856_v16, %v1679_v15  ;;  %v443_v16 = vld [vmem:[%s2966_s8] sm:$0x3] }
  0xca   :  { %647 = vmatpush.bf16.msrb.mxu0 %v2225_v38  ;;  %v446_v18 = vperm.slane %v443_v16, 1  ;;  %v445_v27 = vperm.slane %v443_v16, 0 }
  0xcb   :  { %572 = vmatpush.bf16.msrb.mxu2 %v1680_v19  ;;  %665 = vmatpush.bf16.msra.mxu1 %v2246_v45 }
  0xcd   :  { %583 = vmatpush.bf16.msra.mxu3 %v1636_v33 }
  0xce   :  { %648 = vmatpush.bf16.msrb.mxu0 %v2266_v52 }
  0xcf   :  { %631 = vmatpush.bf16.msra.mxu2 %v2140_v9  ;;  %666 = vmatpush.bf16.msra.mxu1 %v2282_v57 }
  0xd1   :  { %584 = vmatpush.bf16.msra.mxu3 %v1628_v48 }
  0xd2   :  { %649 = vmatpush.bf16.msrb.mxu0 %v2297_v62 }
  0xd3   :  { %632 = vmatpush.bf16.msra.mxu2 %v2147_v11  ;;  %667 = vmatpush.bf16.msra.mxu1 %v2312_v3 }
  0xd5   :  { %585 = vmatpush.bf16.msra.mxu3 %v1620_v60 }
  0xd6   :  { %650 = vmatpush.bf16.msrb.mxu0 %v2325_v7 }
  0xd7   :  { %633 = vmatpush.bf16.msra.mxu2 %v2177_v21  ;;  %668 = vmatpush.bf16.msra.mxu1 %v2328_v8 }
  0xd9   :  { %682 = vmatpush.bf16.msrb.mxu3 %v2204_v31 }
  0xdb   :  { %634 = vmatpush.bf16.msra.mxu2 %v2223_v37  ;;  %669 = vmatpush.bf16.msra.mxu1 %v2344_v17 }
  0xdd   :  { %683 = vmatpush.bf16.msrb.mxu3 %v2243_v44 }
  0xdf   :  { %635 = vmatpush.bf16.msra.mxu2 %v2264_v51  ;;  %670 = vmatpush.bf16.msra.mxu1 %v2371_v29 }
  0xe3   :  { %636 = vmatpush.bf16.msra.mxu2 %v2295_v61 }
  0xe7   :  { %637 = vmatpush.bf16.msra.mxu2 %v2323_v6 }
 0x136   :  { %v415_v28 = vpop.f32.mrf.mxu0 }
 0x13b   :  { %v376_v33 = vpop.f32.mrf.mxu2  ;;  %v389_v34 = vpop.f32.mrf.mxu3 }
 0x13c   :  { %v377_v39 = vadd.f32 %v376_v33, %v2572_v32 }
 0x13e   :  { %v390_v40 = vadd.f32 %v389_v34, %v377_v39  ;;  %v417_v42 = vpop.f32.mrf.mxu0 }
 0x13f   :  { %v2635_v42 = vld [vmem:[%s2971_s13 + $0x78] sm:$0xff] }
 0x140   :  { %v419_v43 = vmax.f32 %v390_v40, 0.0 }
 0x142   :  { %v2581_v48 = vpack.c.bf16 %v419_v43, %v419_v43  ;;  %v2640_v43 = vld [vmem:[%s2971_s13 + $0x70] sm:$0xff] }
 0x143   :  { %v391_v49 = vpop.f32.mrf.mxu3  ;;  %v378_v53 = vpop.f32.mrf.mxu2 }
 0x144   :  { %2977 = vst [vmem:[#allocation15_spill] sm:$0xff] %v2581_v48  ;;  %560 = vmatmul.bf16.vlgmr.msrb.gmra.mxu1 %v2581_v48  ;;  %586 = vmatmul.bf16.vlgmr.msra.gmra.mxu3 %v2581_v48  ;;  %v2646_v53 = vld [vmem:[%s2971_s13 + $0x68] sm:$0xff] }
 0x145   :  { %781 = vmatpush.bf16.msrb.mxu1 %v2143_v10  ;;  %722 = vmatpush.msra.mxu3 %v2635_v42 }
 0x147   :  { %723 = vmatpush.msra.mxu3 %v2640_v43 }
 0x149   :  { %782 = vmatpush.bf16.msrb.mxu1 %v2149_v12  ;;  %724 = vmatpush.msra.mxu3 %v2646_v53 }
 0x14b   :  { %v402_v56 = vpop.f32.mrf.mxu3 }
 0x14c   :  { %v403_v59 = vadd.f32 %v402_v56, %v2588_v54  ;;  %v2651_v56 = vld [vmem:[%s2971_s13 + $0x98] sm:$0xff] }
 0x14d   :  { %783 = vmatpush.bf16.msrb.mxu1 %v2179_v22 }
 0x14e   :  { %v416_v60 = vadd.f32 %v415_v28, %v403_v59 }
 0x150   :  { %v420_v63 = vmax.f32 %v416_v60, 0.0  ;;  %v2658_v60 = vld [vmem:[%s2971_s13 + $0x90] sm:$0xff] }
 0x151   :  { %784 = vmatpush.bf16.msrb.mxu1 %v2225_v38 }
 0x152   :  { %v2594_v0 = vpack.c.bf16 %v420_v63, %v420_v63 }
 0x153   :  { %v404_v1 = vpop.f32.mrf.mxu3 }
 0x154   :  { %2978 = vst [vmem:[#allocation16_spill] sm:$0xff] %v2594_v0  ;;  %1693 = vmatmul.msk.bf16.vlgmr.msrb.gmra.mxu2 %vm363_vm2, %v2594_v0  ;;  %1694 = vmatmul.msk.bf16.vlgmr.msra.gmra.mxu0 %vm363_vm2, %v2594_v0  ;;  %v2664_v1 = vld [vmem:[%s2971_s13 + $0x60] sm:$0xff] }
 0x155   :  { %689 = vmatpush.bf16.msrb.mxu2 %v2251_v47  ;;  %708 = vmatpush.bf16.msra.mxu0 %v2357_v24 }
 0x156   :  { %785 = vmatpush.bf16.msrb.mxu1 %v2266_v52  ;;  %725 = vmatpush.msra.mxu3 %v2664_v1 }
 0x159   :  { %690 = vmatpush.bf16.msrb.mxu2 %v2285_v58  ;;  %709 = vmatpush.bf16.msra.mxu0 %v2384_v36 }
 0x15a   :  { %786 = vmatpush.bf16.msrb.mxu1 %v2297_v62 }
 0x15d   :  { %691 = vmatpush.bf16.msrb.mxu2 %v2355_v23 }
 0x15e   :  { %787 = vmatpush.bf16.msrb.mxu1 %v2325_v7 }
 0x161   :  { %692 = vmatpush.bf16.msrb.mxu2 %v2382_v35 }
 0x164   :  { %1695 = vmatmul.msk.bf16.vlgmr.msra.gmra.mxu2 %vm196_vm1, %v626_v2  ;;  %1696 = vmatmul.msk.bf16.vlgmr.msrb.gmra.mxu0 %vm196_vm1, %v626_v2  ;;  %v2669_v2 = vld [vmem:[%s2971_s13 + $0x88] sm:$0xff] }
 0x165   :  { %693 = vmatpush.bf16.msrb.mxu2 %v2395_v41  ;;  %768 = vmatpush.bf16.msrb.mxu0 %v2140_v9 }
 0x169   :  { %694 = vmatpush.bf16.msrb.mxu2 %v2404_v46  ;;  %769 = vmatpush.bf16.msrb.mxu0 %v2147_v11 }
 0x16d   :  { %695 = vmatpush.bf16.msrb.mxu2 %v2413_v50  ;;  %770 = vmatpush.bf16.msrb.mxu0 %v2177_v21 }
 0x171   :  { %696 = vmatpush.bf16.msrb.mxu2 %v2422_v55  ;;  %771 = vmatpush.bf16.msrb.mxu0 %v2223_v37 }
 0x175   :  { %772 = vmatpush.bf16.msrb.mxu0 %v2264_v51  ;;  %754 = vmatpush.msra.mxu2 %v2651_v56 }
 0x177   :  { %755 = vmatpush.msra.mxu2 %v2658_v60 }
 0x179   :  { %773 = vmatpush.bf16.msrb.mxu0 %v2295_v61  ;;  %756 = vmatpush.msra.mxu2 %v2669_v2 }
 0x17d   :  { %774 = vmatpush.bf16.msrb.mxu0 %v2323_v6 }
 0x1c1   :  { %v561_v4 = vpop.f32.mrf.mxu1 }
 0x1c2   :  { %v562_v33 = vadd.f32 %v561_v4, %v445_v27 }
 0x1c7   :  { %v587_v5 = vpop.f32.mrf.mxu3 }
 0x1c8   :  { %v588_v20 = vadd.f32 %v587_v5, %v446_v18  ;;  %v2676_v5 = vld [vmem:[%s2971_s13 + $0x58] sm:$0xff]  ;;  %v2688_v18 = vld [vmem:[%s2971_s13 + $0x50] sm:$0xff] }
 0x1c9   :  { %v563_v15 = vpop.f32.mrf.mxu1  ;;  %726 = vmatpush.msra.mxu3 %v2676_v5 }
 0x1ca   :  { %v2681_v15 = vld [vmem:[%s2971_s13 + $0x80] sm:$0xff] }
 0x1cb   :  { %757 = vmatpush.msra.mxu2 %v2681_v15  ;;  %727 = vmatpush.msra.mxu3 %v2688_v18 }
 0x1cf   :  { %v589_v19 = vpop.f32.mrf.mxu3 }
 0x1d1   :  { %v600_v26 = vpop.f32.mrf.mxu0 }
 0x1d2   :  { %v2628_v28 = vadd.f32 %v600_v26, %v588_v20  ;;  %v2698_v26 = vld [vmem:[%s2971_s13 + $0x48] sm:$0xff] }
 0x1d3   :  { %728 = vmatpush.msra.mxu3 %v2698_v26 }
 0x1d7   :  { %v574_v34 = vpop.f32.mrf.mxu2 }
 0x1d8   :  { %v2630_v39 = vadd.f32 %v574_v34, %v562_v33  ;;  %v2705_v34 = vld [vmem:[%s2971_s13 + $0x40] sm:$0xff] }
 0x1d9   :  { %v602_v40 = vpop.f32.mrf.mxu0  ;;  %729 = vmatpush.msra.mxu3 %v2705_v34 }
 0x1df   :  { %v576_v49 = vpop.f32.mrf.mxu2 }
 0x1e0   :  { %v2711_v49 = vld [vmem:[%s2971_s13 + $0x38] sm:$0xff] }
 0x1e1   :  { %v652_v59 = vpop.f32.mrf.mxu0  ;;  %730 = vmatpush.msra.mxu3 %v2711_v49 }
 0x1e2   :  { %v653_v63 = vadd.f32 %v652_v59, %v2448_v14  ;;  %v2718_v59 = vld [vmem:[%s2971_s13 + $0x30] sm:$0xff] }
 0x1e3   :  { %731 = vmatpush.msra.mxu3 %v2718_v59 }
 0x1e4   :  { %v657_v4 = vmax.f32 %v653_v63, 0.0 }
 0x1e6   :  { %v659_v16 = vpack.c.bf16 %v657_v4, %v657_v4  ;;  %v2725_v4 = vld [vmem:[%s2971_s13 + $0x28] sm:$0xff] }
 0x1e7   :  { %v639_v19 = vpop.f32.mrf.mxu2  ;;  %732 = vmatpush.msra.mxu3 %v2725_v4 }
 0x1e8   :  { %v640_v20 = vadd.f32 %v639_v19, %v2446_v13  ;;  %1697 = vmatmul.msk.bf16.vlgmr.msrb.gmra.mxu3 %vm363_vm2, %v659_v16  ;;  %1698 = vmatmul.msk.bf16.vlgmr.msra.gmra.mxu0 %vm363_vm2, %v659_v16  ;;  %v1700_v16 = vld [vmem:[%s2959_s1 + $0x4] sm:$0xf] }
 0x1e9   :  { %v654_v27 = vpop.f32.mrf.mxu0  ;;  %845 = vmatpush.bf16.msra.mxu0 %v2357_v24 }
 0x1ea   :  { %v656_v33 = vmax.f32 %v640_v20, 0.0 }
 0x1ec   :  { %v658_v40 = vpack.c.bf16 %v656_v33, %v656_v33 }
 0x1ed   :  { %846 = vmatpush.bf16.msra.mxu0 %v2384_v36 }
 0x1ee   :  { %671 = vmatmul.bf16.vlgmr.msra.gmra.mxu1 %v658_v40  ;;  %697 = vmatmul.bf16.vlgmr.msrb.gmra.mxu2 %v658_v40 }
 0x1ef   :  { %v641_v63 = vpop.f32.mrf.mxu2  ;;  %800 = vmatpush.bf16.msrb.mxu2 %v2187_v25  ;;  %859 = vmatpush.msra.mxu1 %v2635_v42 }
 0x1f1   :  { %860 = vmatpush.msra.mxu1 %v2640_v43 }
 0x1f3   :  { %801 = vmatpush.bf16.msrb.mxu2 %v2202_v30  ;;  %861 = vmatpush.msra.mxu1 %v2646_v53 }
 0x1f5   :  { %862 = vmatpush.msra.mxu1 %v2664_v1 }
 0x1f7   :  { %802 = vmatpush.bf16.msrb.mxu2 %v2246_v45  ;;  %863 = vmatpush.msra.mxu1 %v2676_v5 }
 0x1f8   :  { %1701 = vmatmul.msk.bf16.vlgmr.msrb.gmra.mxu0 %vm196_vm1, %v1700_v16 }
 0x1f9   :  { %905 = vmatpush.bf16.msrb.mxu0 %v2140_v9  ;;  %864 = vmatpush.msra.mxu1 %v2688_v18  ;;  %v2762_v9 = vld [vmem:[%s2971_s13 + $0x20] sm:$0xff] }
 0x1fa   :  { %733 = vmatpush.msra.mxu3 %v2762_v9 }
 0x1fb   :  { %803 = vmatpush.bf16.msrb.mxu2 %v2282_v57  ;;  %865 = vmatpush.msra.mxu1 %v2698_v26 }
 0x1fd   :  { %906 = vmatpush.bf16.msrb.mxu0 %v2147_v11  ;;  %866 = vmatpush.msra.mxu1 %v2705_v34  ;;  %v2767_v11 = vld [vmem:[%s2971_s13 + $0x18] sm:$0xff] }
 0x1fe   :  { %1702 = vmatmul.msk.bf16.vlgmr.msrb.gmra.mxu1 %vm196_vm1, %v1700_v16  ;;  %734 = vmatpush.msra.mxu3 %v2767_v11 }
 0x1ff   :  { %804 = vmatpush.bf16.msrb.mxu2 %v2312_v3  ;;  %867 = vmatpush.msra.mxu1 %v2711_v49 }
 0x201   :  { %907 = vmatpush.bf16.msrb.mxu0 %v2177_v21  ;;  %868 = vmatpush.msra.mxu1 %v2718_v59  ;;  %v2774_v21 = vld [vmem:[%s2971_s13 + $0x10] sm:$0xff] }
 0x202   :  { %735 = vmatpush.msra.mxu3 %v2774_v21 }
 0x203   :  { %805 = vmatpush.bf16.msrb.mxu2 %v2328_v8  ;;  %869 = vmatpush.msra.mxu1 %v2725_v4 }
 0x205   :  { %908 = vmatpush.bf16.msrb.mxu0 %v2223_v37  ;;  %870 = vmatpush.msra.mxu1 %v2762_v9  ;;  %v2783_v37 = vld [vmem:[%s2971_s13 + $0x8] sm:$0xff] }
 0x206   :  { %736 = vmatpush.msra.mxu3 %v2783_v37 }
 0x207   :  { %806 = vmatpush.bf16.msrb.mxu2 %v2344_v17  ;;  %871 = vmatpush.msra.mxu1 %v2767_v11 }
 0x209   :  { %909 = vmatpush.bf16.msrb.mxu0 %v2264_v51  ;;  %872 = vmatpush.msra.mxu1 %v2774_v21  ;;  %v2790_v51 = vld [vmem:[%s2971_s13] sm:$0xff] }
 0x20a   :  { %737 = vmatpush.msra.mxu3 %v2790_v51 }
 0x20b   :  { %807 = vmatpush.bf16.msrb.mxu2 %v2371_v29  ;;  %873 = vmatpush.msra.mxu1 %v2783_v37 }
 0x20c   :  { %819 = vmatpush.bf16.msrb.mxu3 %v2204_v31 }
 0x20d   :  { %910 = vmatpush.bf16.msrb.mxu0 %v2295_v61  ;;  %874 = vmatpush.msra.mxu1 %v2790_v51 }
 0x20f   :  { %956 = vmatpush.bf16.msrb.mxu1 %v2204_v31 }
 0x210   :  { %820 = vmatpush.bf16.msrb.mxu3 %v2243_v44 }
 0x211   :  { %911 = vmatpush.bf16.msrb.mxu0 %v2323_v6 }
 0x213   :  { %957 = vmatpush.bf16.msrb.mxu1 %v2243_v44 }
 0x265   :  { %v711_v61 = vpop.f32.mrf.mxu0 }
 0x26b   :  { %v672_v6 = vpop.f32.mrf.mxu1  ;;  %v685_v19 = vpop.f32.mrf.mxu3 }
 0x26c   :  { %v673_v20 = vadd.f32 %v672_v6, %v2572_v32 }
 0x26d   :  { %v713_v27 = vpop.f32.mrf.mxu0 }
 0x26e   :  { %v2799_v33 = vadd.f32 %v685_v19, %v673_v20 }
 0x270   :  { %v2976_v40 = vmax.f32 %v2799_v33, 0.0 }
 0x271   :  { %v698_v63 = vpop.f32.mrf.mxu2 }
 0x272   :  { %v717_v16 = vmul.f32 %v2976_v40, %v2630_v39  ;;  %v699_v31 = vadd.f32 %v698_v63, %v2588_v54 }
 0x273   :  { %v674_v48 = vpop.f32.mrf.mxu1  ;;  %v687_v0 = vpop.f32.mrf.mxu3 }
 0x274   :  { %v2806_v44 = vadd.f32 %v711_v61, %v699_v31  ;;  %738 = vmatmul.f32.vlgmr.msra.gmra.mxu3 %v717_v16 }
 0x275   :  { %826 = vmatpush.bf16.msra.mxu3 %v2251_v47  ;;  %v776_v6 = vpop.f32.mrf.mxu0 }
 0x276   :  { %v716_v19 = vmax.f32 %v2806_v44, 0.0  ;;  %v777_v20 = vadd.f32 %v776_v6, %v2446_v13 }
 0x278   :  { %v718_v27 = vmul.f32 %v716_v19, %v2628_v28  ;;  %v793_v48 = vmax.f32 %v777_v20, 0.0 }
 0x279   :  { %827 = vmatpush.bf16.msra.mxu3 %v2285_v58  ;;  %v700_v40 = vpop.f32.mrf.mxu2 }
 0x27a   :  { %1699 = vmatmul.msk.f32.vlgmr.msra.gmra.mxu2 %vm363_vm2, %v718_v27  ;;  %v795_v16 = vpack.c.bf16 %v793_v48, %v793_v48 }
 0x27b   :  { %v789_v0 = vpop.f32.mrf.mxu1  ;;  %891 = vmatpush.msra.mxu2 %v2651_v56 }
 0x27c   :  { %v790_v61 = vadd.f32 %v789_v0, %v2448_v14 }
 0x27d   :  { %828 = vmatpush.bf16.msra.mxu3 %v2355_v23  ;;  %v778_v63 = vpop.f32.mrf.mxu0  ;;  %892 = vmatpush.msra.mxu2 %v2658_v60 }
 0x27e   :  { %v794_v31 = vmax.f32 %v790_v61, 0.0 }
 0x27f   :  { %893 = vmatpush.msra.mxu2 %v2669_v2 }
 0x280   :  { %v796_v6 = vpack.c.bf16 %v794_v31, %v794_v31  ;;  %v624_v31 = vld [vmem:[%s2972_s14] sm:$0x1f] }
 0x281   :  { %829 = vmatpush.bf16.msra.mxu3 %v2382_v35  ;;  %894 = vmatpush.msra.mxu2 %v2681_v15 }
 0x282   :  { %808 = vmatmul.bf16.vlgmr.msrb.gmra.mxu2 %v795_v16  ;;  %1703 = vmatmul.msk.bf16.vlgmr.msrb.gmra.mxu3 %vm363_vm2, %v796_v6 }
 0x283   :  { %1704 = vmatmul.msk.bf16.vlgmr.msra.gmra.mxu0 %vm363_vm2, %v796_v6  ;;  %v791_v40 = vpop.f32.mrf.mxu1  ;;  %918 = vmatpush.bf16.msrb.mxu2 %v2143_v10 }
 0x284   :  { %963 = vmatpush.bf16.msra.mxu0 %v2251_v47 }
 0x285   :  { %830 = vmatpush.bf16.msra.mxu3 %v2395_v41 }
 0x287   :  { %919 = vmatpush.bf16.msrb.mxu2 %v2149_v12 }
 0x288   :  { %964 = vmatpush.bf16.msra.mxu0 %v2285_v58 }
 0x289   :  { %831 = vmatpush.bf16.msra.mxu3 %v2404_v46 }
 0x28b   :  { %920 = vmatpush.bf16.msrb.mxu2 %v2179_v22 }
 0x28c   :  { %965 = vmatpush.bf16.msra.mxu0 %v2355_v23 }
 0x28d   :  { %832 = vmatpush.bf16.msra.mxu3 %v2413_v50 }
 0x28f   :  { %921 = vmatpush.bf16.msrb.mxu2 %v2225_v38 }
 0x290   :  { %966 = vmatpush.bf16.msra.mxu0 %v2382_v35 }
 0x291   :  { %833 = vmatpush.bf16.msra.mxu3 %v2422_v55 }
 0x293   :  { %922 = vmatpush.bf16.msrb.mxu2 %v2266_v52 }
 0x294   :  { %834 = vmatmul.bf16.vlgmr.msra.gmra.mxu3 %v795_v16  ;;  %967 = vmatpush.bf16.msra.mxu0 %v2395_v41 }
 0x295   :  { %937 = vmatpush.bf16.msrb.mxu3 %v2187_v25 }
 0x297   :  { %923 = vmatpush.bf16.msrb.mxu2 %v2297_v62 }
 0x298   :  { %968 = vmatpush.bf16.msra.mxu0 %v2404_v46 }
 0x299   :  { %938 = vmatpush.bf16.msrb.mxu3 %v2202_v30  ;;  %v1706_v30 = vld [vmem:[%s2959_s1 + $0x8] sm:$0xf] }
 0x29a   :  { %1707 = vmatmul.msk.bf16.vlgmr.msrb.gmra.mxu0 %vm196_vm1, %v1706_v30 }
 0x29b   :  { %924 = vmatpush.bf16.msrb.mxu2 %v2325_v7 }
 0x29c   :  { %969 = vmatpush.bf16.msra.mxu0 %v2413_v50 }
 0x29d   :  { %939 = vmatpush.bf16.msrb.mxu3 %v2246_v45 }
 0x2a0   :  { %970 = vmatpush.bf16.msra.mxu0 %v2422_v55 }
 0x2a1   :  { %940 = vmatpush.bf16.msrb.mxu3 %v2282_v57 }
 0x2a5   :  { %941 = vmatpush.bf16.msrb.mxu3 %v2312_v3 }
 0x2a9   :  { %942 = vmatpush.bf16.msrb.mxu3 %v2328_v8 }
 0x2ad   :  { %943 = vmatpush.bf16.msrb.mxu3 %v2344_v17 }
 0x2b1   :  { %944 = vmatpush.bf16.msrb.mxu3 %v2371_v29 }
 0x2b5   :  { %1712 = vmatpush.msk.msra.mxu3 %vm1069_vm3, %v624_v31 }
 0x2f7   :  { %v739_v10 = vpop.f32.mrf.mxu3 }
 0x2fd   :  { %v759_v12 = vpop.f32.mrf.mxu2 }
 0x2fe   :  { %v2852_v22 = vadd.f32 %v759_v12, %v739_v10  ;;  %v1868_v12 = vld [vmem:[#allocation7 + $0x48] sm:$0xff] }
 0x300   :  { %v848_v25 = vpop.f32.mrf.mxu0 }
 0x305   :  { %v809_v38 = vpop.f32.mrf.mxu2  ;;  %v822_v45 = vpop.f32.mrf.mxu3 }
 0x306   :  { %v810_v47 = vadd.f32 %v809_v38, %v2572_v32 }
 0x308   :  { %v2859_v52 = vadd.f32 %v822_v45, %v810_v47  ;;  %v850_v57 = vpop.f32.mrf.mxu0 }
 0x30a   :  { %v852_v58 = vmax.f32 %v2859_v52, 0.0 }
 0x30c   :  { %v854_v62 = vmul.f32 %v852_v58, %v2630_v39 }
 0x30d   :  { %v824_v3 = vpop.f32.mrf.mxu3  ;;  %v811_v7 = vpop.f32.mrf.mxu2 }
 0x30e   :  { %875 = vmatmul.f32.vlgmr.msra.gmra.mxu1 %v854_v62 }
 0x30f   :  { %982 = vmatpush.bf16.msra.mxu1 %v2357_v24 }
 0x313   :  { %983 = vmatpush.bf16.msra.mxu1 %v2384_v36 }
 0x317   :  { %v835_v8 = vpop.f32.mrf.mxu3  ;;  %v913_v24 = vpop.f32.mrf.mxu0 }
 0x318   :  { %v836_v17 = vadd.f32 %v835_v8, %v2588_v54  ;;  %v914_v36 = vadd.f32 %v913_v24, %v2446_v13 }
 0x31a   :  { %v2868_v23 = vadd.f32 %v848_v25, %v836_v17  ;;  %v930_v46 = vmax.f32 %v914_v36, 0.0 }
 0x31c   :  { %v853_v29 = vmax.f32 %v2868_v23, 0.0  ;;  %v932_v50 = vpack.c.bf16 %v930_v46, %v930_v46 }
 0x31e   :  { %v855_v35 = vmul.f32 %v853_v29, %v2628_v28  ;;  %945 = vmatmul.bf16.vlgmr.msrb.gmra.mxu3 %v932_v50  ;;  %971 = vmatmul.bf16.vlgmr.msra.gmra.mxu0 %v932_v50 }
 0x31f   :  { %v837_v41 = vpop.f32.mrf.mxu3  ;;  %v915_v55 = vpop.f32.mrf.mxu0  ;;  %1716 = vmatpush.msk.msrb.mxu3 %vm1069_vm3, %v624_v31 }
 0x320   :  { %1705 = vmatmul.msk.f32.vlgmr.msra.gmra.mxu2 %vm363_vm2, %v855_v35 }
 0x321   :  { %996 = vmatpush.msra.mxu2 %v2635_v42 }
 0x323   :  { %997 = vmatpush.msra.mxu2 %v2640_v43 }
 0x325   :  { %998 = vmatpush.msra.mxu2 %v2646_v53 }
 0x327   :  { %999 = vmatpush.msra.mxu2 %v2664_v1 }
 0x328   :  { %1708 = vmatmul.msk.bf16.vlgmr.msrb.gmra.mxu2 %vm196_vm1, %v1706_v30 }
 0x329   :  { %1000 = vmatpush.msra.mxu2 %v2676_v5 }
 0x32b   :  { %1001 = vmatpush.msra.mxu2 %v2688_v18 }
 0x32d   :  { %1002 = vmatpush.msra.mxu2 %v2698_v26 }
 0x32f   :  { %1003 = vmatpush.msra.mxu2 %v2705_v34 }
 0x331   :  { %1004 = vmatpush.msra.mxu2 %v2711_v49 }
 0x333   :  { %1005 = vmatpush.msra.mxu2 %v2718_v59 }
 0x335   :  { %1006 = vmatpush.msra.mxu2 %v2725_v4 }
 0x337   :  { %1007 = vmatpush.msra.mxu2 %v2762_v9 }
 0x339   :  { %1008 = vmatpush.msra.mxu2 %v2767_v11 }
 0x33b   :  { %1009 = vmatpush.msra.mxu2 %v2774_v21 }
 0x33d   :  { %1010 = vmatpush.msra.mxu2 %v2783_v37 }
 0x33f   :  { %1011 = vmatpush.msra.mxu2 %v2790_v51 }
 0x38b   :  { %v876_v42 = vpop.f32.mrf.mxu1 }
 0x39b   :  { %v972_v13 = vpop.f32.mrf.mxu0 }
 0x3a1   :  { %v946_v59 = vpop.f32.mrf.mxu3 }
 0x3a3   :  { %v896_v43 = vpop.f32.mrf.mxu2  ;;  %v974_v4 = vpop.f32.mrf.mxu0 }
 0x3a4   :  { %v897_v53 = vadd.f32 %v896_v43, %v876_v42  ;;  %v1866_v42 = vld [vmem:[#allocation7 + $0x38] sm:$0xff]  ;;  %v1876_v43 = vld [vmem:[#allocation8 + $0x38] sm:$0xff] }
 0x3a5   :  { %v2980_v4 = vld [vmem:[#allocation15_spill] sm:$0xff] }
 0x3a6   :  { %v1036_v1 = vmax.f32 %v2852_v22, %v897_v53 }
 0x3a9   :  { %v948_v9 = vpop.f32.mrf.mxu3 }
 0x3aa   :  { %v1874_v9 = vld [vmem:[#allocation8 + $0x28] sm:$0xff] }
 0x3ab   :  { %v926_v5 = vpop.f32.mrf.mxu2 }
 0x3ac   :  { %v927_v18 = vadd.f32 %v926_v5, %v2448_v14  ;;  %v947_v14 = vadd.f32 %v946_v59, %v2572_v32  ;;  %v1864_v5 = vld [vmem:[#allocation7 + $0x28] sm:$0xff]  ;;  %v1859_v59 = vld [vmem:[#allocation7] sm:$0xff] }
 0x3ae   :  { %v931_v26 = vmax.f32 %v927_v18, 0.0  ;;  %v2979_v18 = vld [vmem:[#allocation16_spill] sm:$0xff] }
 0x3b0   :  { %v933_v34 = vpack.c.bf16 %v931_v26, %v931_v26  ;;  %v1863_v26 = vld [vmem:[#allocation7 + $0x20] sm:$0xff] }
 0x3b2   :  { %1709 = vmatmul.msk.bf16.vlgmr.msrb.gmra.mxu1 %vm363_vm2, %v933_v34 }
 0x3b3   :  { %v928_v49 = vpop.f32.mrf.mxu2  ;;  %1028 = vmatpush.msrb.mxu1 %v2651_v56 }
 0x3b4   :  { %v1861_v49 = vld [vmem:[#allocation7 + $0x10] sm:$0xff] }
 0x3b5   :  { %1029 = vmatpush.msrb.mxu1 %v2658_v60 }
 0x3b7   :  { %1030 = vmatpush.msrb.mxu1 %v2669_v2  ;;  %v973_v2 = vadd.f32 %v972_v13, %v2588_v54  ;;  %v1860_v13 = vld [vmem:[#allocation7 + $0x8] sm:$0xff] }
 0x3b9   :  { %1031 = vmatpush.msrb.mxu1 %v2681_v15 }
 0x3c2   :  { %1710 = vmatmul.msk.bf16.vlgmr.msra.gmra.mxu1 %vm363_vm2, %v933_v34  ;;  %v1862_v34 = vld [vmem:[#allocation7 + $0x18] sm:$0xff] }
 0x42f   :  { %v959_v11 = vpop.f32.mrf.mxu1 }
 0x430   :  { %v2902_v21 = vadd.f32 %v959_v11, %v947_v14  ;;  %v1873_v14 = vld [vmem:[#allocation8 + $0x20] sm:$0xff]  ;;  %v1878_v11 = vld [vmem:[#allocation8 + $0x48] sm:$0xff] }
 0x432   :  { %v989_v37 = vmax.f32 %v2902_v21, 0.0 }
 0x434   :  { %v991_v56 = vmul.f32 %v989_v37, %v2630_v39 }
 0x436   :  { %1012 = vmatmul.f32.vlgmr.msra.gmra.mxu2 %v991_v56  ;;  %v1872_v56 = vld [vmem:[#allocation8 + $0x18] sm:$0xff] }
 0x437   :  { %v961_v60 = vpop.f32.mrf.mxu1 }
 0x438   :  { %v1877_v60 = vld [vmem:[#allocation8 + $0x40] sm:$0xff] }
 0x43f   :  { %v985_v15 = vpop.f32.mrf.mxu1 }
 0x440   :  { %v2909_v51 = vadd.f32 %v985_v15, %v973_v2  ;;  %v1871_v2 = vld [vmem:[#allocation8 + $0x10] sm:$0xff]  ;;  %v1870_v15 = vld [vmem:[#allocation8 + $0x8] sm:$0xff] }
 0x442   :  { %v990_v20 = vmax.f32 %v2909_v51, 0.0 }
 0x444   :  { %v992_v32 = vmul.f32 %v990_v20, %v2628_v28  ;;  %v625_v28 = vld [vmem:[%s2972_s14 + $0x8] sm:$0x1f] }
 0x445   :  { %1718 = vmatpush.msk.msrb.mxu0 %vm1069_vm3, %v625_v28  ;;  %1722 = vmatpush.msk.msrb.mxu2 %vm1069_vm3, %v625_v28 }
 0x446   :  { %1711 = vmatmul.msk.f32.vlgmr.msrb.gmra.mxu1 %vm363_vm2, %v992_v32  ;;  %v2030_v32 = vmov 0  }
 0x447   :  { %v987_v27 = vpop.f32.mrf.mxu1  ;;  %1714 = vmatpush.msk.msra.mxu1 %vm1069_vm3, %v625_v28  ;;  %1424 = vmatpush.bf16.msra.mxu2 %v1868_v12 }
 0x448   :  { %1338 = vmatpush.bf16.msra.mxu0 %v1878_v11  ;;  %v1438_v27 = vsel %vm200_vm0, 65535, %v2030_v32 }
 0x449   :  { %1720 = vmatpush.msk.msrb.mxu1 %vm1069_vm3, %v624_v31 }
 0x44c   :  { %1339 = vmatpush.bf16.msra.mxu0 %v1877_v60 }
 0x4b9   :  { %v1013_v48 = vpop.f32.mrf.mxu2 }
 0x4c3   :  { %v1033_v0 = vpop.f32.mrf.mxu1 }
 0x4c4   :  { %v1034_v61 = vadd.f32 %v1033_v0, %v1013_v48  ;;  %v1869_v48 = vld [vmem:[#allocation8] sm:$0xff]  ;;  %v1432_v0 = vld [vmem:[%s2969_s11] sm:$0x1] }
 0x4c6   :  { %v1037_v39 = vmax.f32 %v1036_v1, %v1034_v61  ;;  %v1875_v1 = vld [vmem:[#allocation8 + $0x30] sm:$0xff] }
 0x4c8   :  { %v1038_v63 = vsub.f32 %v2852_v22, %v1037_v39  ;;  %v1041_v16 = vsub.f32 %v897_v53, %v1037_v39  ;;  %v1044_v54 = vsub.f32 %v1034_v61, %v1037_v39  ;;  %v1867_v22 = vld [vmem:[#allocation7 + $0x40] sm:$0xff]  ;;  %v1865_v53 = vld [vmem:[#allocation7 + $0x30] sm:$0xff]  ;;  %v1440_v61 = vand.u32 %v1438_v27, %v1432_v0 }
 0x4c9   :  { %1425 = vmatpush.bf16.msra.mxu2 %v1867_v22 }
 0x4ca   :  { %v1039_v6 = vmul.f32 1.442695, %v1038_v63  ;;  %v1042_v40 = vmul.f32 1.442695, %v1041_v16  ;;  %v1045_v10 = vmul.f32 1.442695, %v1044_v54 }
 0x4cc   :  { %1888 = vpow2.f32 %v1039_v6 }
 0x4cd   :  { %1890 = vpow2.f32 %v1042_v40 }
 0x4ce   :  { %1892 = vpow2.f32 %v1045_v10 }
 0x4d2   :  { %v1889_v25 = vpop.eup %1888 }
 0x4d3   :  { %v1891_v30 = vpop.eup %1890 }
 0x4d4   :  { %v1047_v38 = vadd.f32 %v1891_v30, %v1889_v25  ;;  %v1893_v45 = vpop.eup %1892 }
 0x4d6   :  { %v1048_v47 = vadd.f32 %v1893_v45, %v1047_v38 }
 0x4d8   :  { %1894 = vrcp.f32 %v1048_v47  ;;  %v1060_v7 = vand.u32 2147483648, %v1048_v47  ;;  %v1058_v17 = vand.u32 2147483647, %v1048_v47  ;;  %vm1054_vm5 = vweird.f32 %v1048_v47 }
 0x4da   :  { %v1061_v41 = vor.u32 1.1754944e-38, %v1060_v7  ;;  %vm1059_vm7 = vcmp.eq.f32.partialorder %v1058_v17, 8.507059e+37 }
 0x4de   :  { %v1895_v57 = vpop.eup %1894 }
 0x4df   :  { %v1050_v62 = vmul.f32 %v1895_v57, %v1048_v47  ;;  %vm1055_vm4 = vweird.f32 %v1895_v57  ;;  %v1431_v47 = vld [vmem:[%s2960_s2] sm:$0xf]  ;;  %s1469_s2 = sshll.u32 %s2973_s15, 4  ;;  %s1470_s2 = int_to_ptr.hbm [resolvable:$true] %s1469_s2 }
 0x4e0   :  { %vm1056_vm6 = vmor %vm1054_vm5, %vm1055_vm4 }
 0x4e1   :  { %v1051_v3 = vsub.f32 1.0, %v1050_v62 }
 0x4e3   :  { %v1052_v8 = vmul.f32 %v1895_v57, %v1051_v3 }
 0x4e5   :  { %v1053_v35 = vadd.f32 %v1895_v57, %v1052_v8  ;;  %v1887_v8 = vld [vmem:[%s2970_s12] ss:$0 sm:$0xff] }
 0x4e7   :  { %v1057_v24 = vsel %vm1056_vm6, %v1895_v57, %v1053_v35 }
 0x4e8   :  { %v1062_v36 = vsel %vm1059_vm7, %v1061_v41, %v1057_v24 }
 0x4e9   :  { %v1166_v46 = vmul.f32 %v1893_v45, %v1062_v36  ;;  %v1064_v50 = vmul.f32 %v1889_v25, %v1062_v36  ;;  %v1118_v55 = vmul.f32 %v1891_v30, %v1062_v36  ;;  %v2981_v30 = vmax.f32 %v2799_v33, 0.0 }
 0x4eb   :  { %1713 = vmatmul.msk.f32.vlgmr.msra.gmra.mxu3 %vm1065_vm8, %v1064_v50  ;;  %1715 = vmatmul.msk.f32.vlgmr.msra.gmra.mxu1 %vm1065_vm8, %v1064_v50 }
 0x4ec   :  { %1719 = vmatmul.msk.f32.vlgmr.msrb.gmra.mxu0 %vm1065_vm8, %v1118_v55  ;;  %1723 = vmatmul.msk.f32.vlgmr.msrb.gmra.mxu2 %vm1065_vm8, %v1166_v46 }
 0x4ed   :  { %1405 = vmatpush.bf16.msra.mxu1 %v1866_v42  ;;  %1319 = vmatpush.bf16.msra.mxu3 %v1876_v43 }
 0x4ee   :  { %1449 = vmatpush.bf16.msrb.mxu0 %v1440_v61 }
 0x4f1   :  { %1406 = vmatpush.bf16.msra.mxu1 %v1865_v53  ;;  %1320 = vmatpush.bf16.msra.mxu3 %v1875_v1 }
 0x4f3   :  { %1717 = vmatmul.msk.f32.vlgmr.msrb.gmra.mxu3 %vm1065_vm8, %v1118_v55  ;;  %1721 = vmatmul.msk.f32.vlgmr.msrb.gmra.mxu1 %vm1065_vm8, %v1166_v46 }
 0x4f4   :  { %1805 = vmatmul.msk.bf16.vlgmr.msra.gmra.mxu2 %vm363_vm2, %v2979_v18 }
 0x4f5   :  { %1407 = vmatpush.bf16.msra.mxu1 %v1864_v5  ;;  %1321 = vmatpush.bf16.msra.mxu3 %v1874_v9 }
 0x4f9   :  { %1408 = vmatpush.bf16.msra.mxu1 %v1863_v26  ;;  %1322 = vmatpush.bf16.msra.mxu3 %v1873_v14 }
 0x4fd   :  { %1409 = vmatpush.bf16.msra.mxu1 %v1862_v34  ;;  %1323 = vmatpush.bf16.msra.mxu3 %v1872_v56 }
 0x501   :  { %1410 = vmatpush.bf16.msra.mxu1 %v1861_v49  ;;  %1324 = vmatpush.bf16.msra.mxu3 %v1871_v2 }
 0x505   :  { %1411 = vmatpush.bf16.msra.mxu1 %v1860_v13  ;;  %1325 = vmatpush.bf16.msra.mxu3 %v1870_v15 }
 0x509   :  { %1412 = vmatpush.bf16.msra.mxu1 %v1859_v59  ;;  %1326 = vmatpush.bf16.msra.mxu3 %v1869_v48 }
 0x50c   :  { %1413 = vmatmul.bf16.vlgmr.msra.gmra.mxu1 %v2980_v4 }
 0x568   :  { %v1113_v39 = vpop.f32.mrf.mxu1 }
 0x569   :  { %v1159_v63 = vpop.f32.mrf.mxu0  ;;  %v1117_v16 = vmul.f32 %v1113_v39, %v716_v19 }
 0x56a   :  { %v1163_v54 = vmul.f32 %v1159_v63, %v853_v29 }
 0x56c   :  { %v1165_v6 = vadd.f32 %v1163_v54, %v1117_v16 }
 0x56e   :  { %v1093_v31 = vpop.f32.mrf.mxu3 }
 0x56f   :  { %v1207_v28 = vpop.f32.mrf.mxu2  ;;  %v1116_v38 = vmul.f32 %v1093_v31, %v2981_v30 }
 0x570   :  { %v1211_v40 = vmul.f32 %v1207_v28, %v990_v20  ;;  %v1187_v22 = vpop.f32.mrf.mxu1 }
 0x571   :  { %v1210_v23 = vmul.f32 %v1187_v22, %v989_v37 }
 0x572   :  { %v1213_v10 = vadd.f32 %v1211_v40, %v1165_v6 }
 0x574   :  { %v1235_v12 = vpack.c.bf16 %v1213_v10, %v1213_v10 }
 0x576   :  { %1764 = vmatmul.msk.bf16.vlgmr.msra.gmra.mxu0 %vm363_vm2, %v1235_v12  ;;  %v1139_v25 = vpop.f32.mrf.mxu3 }
 0x577   :  { %v1162_v44 = vmul.f32 %v1139_v25, %v852_v58  ;;  %v1427_v19 = vpop.f32.mrf.mxu2 }
 0x579   :  { %v1164_v29 = vadd.f32 %v1162_v44, %v1116_v38 }
 0x57b   :  { %v1212_v45 = vadd.f32 %v1210_v23, %v1164_v29 }
 0x57d   :  { %v1234_v51 = vpack.c.bf16 %v1212_v45, %v1212_v45 }
 0x57f   :  { %v1429_v20 = vpop.f32.mrf.mxu2  ;;  %1327 = vmatmul.bf16.vlgmr.msra.gmra.mxu3 %v1234_v51 }
 0x586   :  { %1806 = vmatmul.msk.bf16.vlgmr.msrb.gmra.mxu0 %vm1433_vm9, %v1431_v47 }
 0x589   :  { %v1414_v33 = vpop.f32.mrf.mxu1 }
 0x591   :  { %v1416_v57 = vpop.f32.mrf.mxu1 }
 0x5f3   :  { %v1341_v62 = vpop.f32.mrf.mxu0 }
 0x5fb   :  { %v1343_v52 = vpop.f32.mrf.mxu0 }
 0x602   :  { %v1328_v58 = vpop.f32.mrf.mxu3 }
 0x603   :  { %v1342_v3 = vadd.f32 %v1341_v62, %v1328_v58  ;;  %v1451_v7 = vpop.f32.mrf.mxu0 }
 0x605   :  { %v1415_v21 = vadd.f32 %v1414_v33, %v1342_v3 }
 0x607   :  { %v1428_v37 = vadd.f32 %v1427_v19, %v1415_v21 }
 0x609   :  { %v1455_v17 = vadd.f32 %v1451_v7, %v1428_v37 }
 0x60a   :  { %v1330_v35 = vpop.f32.mrf.mxu3 }
 0x60b   :  { %v1460_v41 = vadd.f32 %v1887_v8, %v1455_v17  ;;  %v1453_v24 = vpop.f32.mrf.mxu0 }
 0x60d   :  { %1461 = vst [vmem:[#allocation10] sm:$0xff] %v1460_v41 }
 0x60e   :  { %1472 = dma.vmem_to_hbm [thread:$0]  %s1468_s3, 128, %s1470_s2, [#allocation4]  }
 0x60f   :  { %2022 = dma.done.wait [#allocation4], 128  }
 0x610   :  { %2023 = vsyncadd [#allocation4], 4294967168 }
 0x611   :  { %1477 = vsyncpa [#allocation3], 1 }
 0x612   :  { %1478 = vsyncpa [#allocation6], 1 }
 0x613   :  { %1479 = vsyncpa [#allocation9], 1 }
 0x614   :  { %1480 = vsyncpa [#allocation4], 1 }

</bundles_post_ra>
